<compile_context>
chip_gen: v7x
topology: tpu7x:2x2x1
jax: 0.10.0
libtpu: 0.0.40
codegen_flags: <defaults>
</compile_context>

<pallas_src>
import math

import jax
import jax.numpy as jnp
from jax.experimental import pallas as pl
from jax.experimental.pallas import tpu as pltpu

_LANE = 128      # lane width: last-dim tiling unit
_SUBLANE = 8     # sublane width: second-to-last-dim tiling unit


def _round_up(x, m):
    return ((x + m - 1) // m) * m


def _sine_layer_kernel(omega_0):
    """Build the kernel body with omega_0 closed over (static scalar)."""

    def kernel(x_ref, w_ref, b_ref, o_ref):
        # MXU matmul; operands may be bf16, accumulation is always f32.
        z = jnp.dot(x_ref[...], w_ref[...], preferred_element_type=jnp.float32)
        # Bias add + omega_0 scale + sin stay in f32 on the VPU.
        z = z + b_ref[...]                      # (tm, tn) + (1, tn) broadcast
        o_ref[...] = jnp.sin(omega_0 * z).astype(o_ref.dtype)

    return kernel


def sine_layer(x, weight_t, bias=None, omega_0=30.0, *, tm=512, tn=256,
               vmem_budget_bytes=40 * 1024 * 1024):
    """Pallas implementation of SineLayer.forward.

    Args:
      x:        (N, in_features) activations (f32 or bf16).
      weight_t: (in_features, out_features) -- transposed nn.Linear weight,
                stored in this layout once (no per-call transpose).
      bias:     (out_features,) or None.
      omega_0:  frequency scale.
      tm:       max row tile (multiple of 8).
      tn:       max out-feature tile (multiple of 128; 256 matches MXU width).
    """
    n, in_f = x.shape
    k, out_f = weight_t.shape
    assert k == in_f, "weight_t must be (in_features, out_features)"

    # ---- lane-dense output: pad out_features to a multiple of 128 ---------
    out_p = _round_up(out_f, _LANE)
    tn_eff = max(_LANE, (min(tn, out_p) // _LANE) * _LANE)
    if out_p % tn_eff:
        tn_eff = _LANE

    # ---- row tile: large, multiple of 8, shrunk to fit the VMEM budget ----
    n_p8 = _round_up(n, _SUBLANE)
    tm_eff = max(_SUBLANE, min(_round_up(tm, _SUBLANE), n_p8))

    def vmem_estimate(tm_, tn_):
        w_bufs = 1 if out_p == tn_ else 2                 # Buffered(1) if const
        return (2 * tm_ * in_f * x.dtype.itemsize          # x (double-buffered)
                + w_bufs * in_f * tn_ * weight_t.dtype.itemsize
                + w_bufs * _SUBLANE * tn_ * 4               # bias (padded row)
                + 2 * tm_ * tn_ * x.dtype.itemsize)         # output

    while vmem_estimate(tm_eff, tn_eff) > vmem_budget_bytes and tm_eff > 256:
        tm_eff = max(256, ((tm_eff // 2) // _SUBLANE) * _SUBLANE)
    if vmem_estimate(tm_eff, tn_eff) > vmem_budget_bytes and tn_eff > _LANE:
        tn_eff = _LANE

    # ---- grid sizing; keep >= 2 steps so both v7x TensorCores get work ----
    n_pad = _round_up(n, tm_eff)
    grid_rows, grid_cols = n_pad // tm_eff, out_p // tn_eff
    while grid_rows * grid_cols < 2 and tm_eff > _SUBLANE:
        tm_eff = max(_SUBLANE, ((tm_eff // 2) // _SUBLANE) * _SUBLANE)
        n_pad = _round_up(n, tm_eff)
        grid_rows = n_pad // tm_eff

    # ---- pad operands (rows to tm multiple, out features to lane multiple) -
    x_p = x if n_pad == n else jnp.pad(x, ((0, n_pad - n), (0, 0)))
    w_p = (weight_t if out_p == out_f
           else jnp.pad(weight_t, ((0, 0), (0, out_p - out_f))))
    if bias is None:
        b_p = jnp.zeros((1, out_p), jnp.float32)
    else:
        b_p = jnp.pad(bias.astype(jnp.float32),
                      (0, out_p - out_f)).reshape(1, out_p)

    # Weight/bias block index is constant over the grid when there is a single
    # out-feature tile -> no "next" block to prefetch -> single VMEM buffer.
    const_mode = pl.Buffered(1) if grid_cols == 1 else None

    est = vmem_estimate(tm_eff, tn_eff)
    vmem_limit = int(min(64 * 1024 * 1024, max(32 * 1024 * 1024, 2 * est)))

    out_padded = pl.pallas_call(
        _sine_layer_kernel(float(omega_0)),
        out_shape=jax.ShapeDtypeStruct((n_pad, out_p), x.dtype),
        grid_spec=pltpu.PrefetchScalarGridSpec(
            num_scalar_prefetch=0,
            grid=(grid_rows, grid_cols),
            in_specs=[
                pl.BlockSpec((tm_eff, in_f), lambda i, j: (i, 0)),      # x tile
                pl.BlockSpec((in_f, tn_eff), lambda i, j: (0, j),       # W^T
                             pipeline_mode=const_mode),
                pl.BlockSpec((1, tn_eff), lambda i, j: (0, j),          # bias
                             pipeline_mode=const_mode),
            ],
            out_specs=pl.BlockSpec((tm_eff, tn_eff), lambda i, j: (i, j)),
        ),
        compiler_params=pltpu.CompilerParams(
            dimension_semantics=("parallel", "parallel"),
            vmem_limit_bytes=vmem_limit,
        ),
    )(x_p, w_p, b_p)

    return out_padded[:n, :out_f]


def torch_weight_to_pallas(weight):
    """One-time layout conversion from PyTorch nn.Linear (out, in) -> (in, out)."""
    return jnp.asarray(weight).T


def init_sine_layer_params(key, in_features, out_features, is_first=False,
                           omega_0=30.0, dtype=jnp.float32):
    """Parameter init matching SineLayer.init_weights; weight stored as (in, out)."""
    kw, kb = jax.random.split(key)
    if is_first:
        lim = 1.0 / in_features
    else:
        lim = math.sqrt(6.0 / in_features) / omega_0
    weight_t = jax.random.uniform(kw, (in_features, out_features),
                                  minval=-lim, maxval=lim, dtype=dtype)
    # nn.Linear default bias init: U(-1/sqrt(in), 1/sqrt(in))
    blim = 1.0 / math.sqrt(in_features)
    bias = jax.random.uniform(kb, (out_features,),
                              minval=-blim, maxval=blim, dtype=dtype)
    return weight_t, bias


if __name__ == "__main__":
    key = jax.random.PRNGKey(0)
    k_x, k_p1, k_p2 = jax.random.split(key, 3)

    OMEGA_0 = 30.0

    # ---- case 1: SIREN first layer, f32 (coords in R^2 -> 64 features) ----
    N, IN_F, OUT_F = 200, 2, 64
    x = jax.random.uniform(k_x, (N, IN_F), minval=-1.0, maxval=1.0,
                           dtype=jnp.float32)
    w1_t, b1 = init_sine_layer_params(k_p1, IN_F, OUT_F, is_first=True,
                                      omega_0=OMEGA_0)
    out1 = jax.block_until_ready(sine_layer(x, w1_t, b1, omega_0=OMEGA_0))
    ref1 = jnp.sin(OMEGA_0 * (jnp.dot(x, w1_t,
                                      precision=jax.lax.Precision.HIGHEST) + b1))
    assert out1.shape == (N, OUT_F)
    assert jnp.allclose(out1, ref1, atol=1e-4, rtol=1e-4), "f32 mismatch"

    # ---- case 2: hidden layer with bf16 MXU operands (v6e/v7x fast path) ---
    H = 64
    h = ref1                                          # activations from layer 1
    w2_t, b2 = init_sine_layer_params(k_p2, H, H, is_first=False,
                                      omega_0=OMEGA_0)
    h_bf = h.astype(jnp.bfloat16)
    w2_bf = w2_t.astype(jnp.bfloat16)
    out2 = jax.block_until_ready(sine_layer(h_bf, w2_bf, b2, omega_0=OMEGA_0))
    ref2 = jnp.sin(OMEGA_0 * (jnp.dot(h_bf.astype(jnp.float32),
                                      w2_bf.astype(jnp.float32),
                                      precision=jax.lax.Precision.HIGHEST) + b2))
    assert out2.shape == (N, H)
    assert out2.dtype == jnp.bfloat16
    assert jnp.allclose(out2.astype(jnp.float32), ref2, atol=2e-2), "bf16 mismatch"

    print("KERNEL_OK")
</pallas_src>

<mosaic_0001>
module attributes {stable_mosaic.version = 11 : i64} {
  func.func @kernel(%arg0: i32, %arg1: i32, %arg2: memref<96x2xf32, #tpu.memory_space<vmem>>, %arg3: memref<2x128xf32, #tpu.memory_space<vmem>>, %arg4: memref<1x128xf32, #tpu.memory_space<vmem>>, %arg5: memref<96x128xf32, #tpu.memory_space<vmem>>) attributes {dimension_semantics = [#tpu.dimension_semantics<parallel>, #tpu.dimension_semantics<parallel>], iteration_bounds = array<i64: 3, 1>, scalar_prefetch = 0 : i64, scratch_operands = 0 : i64, tpu.core_type = #tpu.core_type<tc>, window_params = [{transform_indices = @transform_0, window_bounds = array<i64: 96, 2>}, {pipeline_mode = #tpu.pipeline_mode<synchronous>, transform_indices = @transform_1, window_bounds = array<i64: 2, 128>}, {pipeline_mode = #tpu.pipeline_mode<synchronous>, transform_indices = @transform_2, window_bounds = array<i64: 1, 128>}, {transform_indices = @transform_3, window_bounds = array<i64: 96, 128>}]} {
    %c0 = arith.constant 0 : index
    %c0_0 = arith.constant 0 : index
    %0 = vector.load %arg2[%c0, %c0_0] : memref<96x2xf32, #tpu.memory_space<vmem>>, vector<96x2xf32>
    %c0_1 = arith.constant 0 : index
    %c0_2 = arith.constant 0 : index
    %1 = vector.load %arg3[%c0_1, %c0_2] : memref<2x128xf32, #tpu.memory_space<vmem>>, vector<2x128xf32>
    %cst = arith.constant dense<0.000000e+00> : vector<96x128xf32>
    %2 = tpu.matmul %0, %1, %cst {dimension_numbers = #tpu.dot_dimension_numbers<[1], [0], [0], [1], [0, 0, 1, 1], [], []>} : vector<96x2xf32>, vector<2x128xf32>, vector<96x128xf32> -> vector<96x128xf32>
    %c0_3 = arith.constant 0 : index
    %c0_4 = arith.constant 0 : index
    %3 = vector.load %arg4[%c0_3, %c0_4] : memref<1x128xf32, #tpu.memory_space<vmem>>, vector<1x128xf32>
    %4 = vector.broadcast %3 : vector<1x128xf32> to vector<96x128xf32>
    %5 = arith.addf %2, %4 : vector<96x128xf32>
    %cst_5 = arith.constant 3.000000e+01 : f32
    %6 = vector.broadcast %cst_5 : f32 to vector<96x128xf32>
    %7 = arith.mulf %6, %5 : vector<96x128xf32>
    %8 = math.sin %7 : vector<96x128xf32>
    %c0_6 = arith.constant 0 : index
    %c0_7 = arith.constant 0 : index
    %9 = vector.load %arg5[%c0_6, %c0_7] : memref<96x128xf32, #tpu.memory_space<vmem>>, vector<96x128xf32>
    tpu.vector_store %arg5[%c0_6, %c0_7], %8 {strides = array<i32>} : memref<96x128xf32, #tpu.memory_space<vmem>>, vector<96x128xf32>,
    return
  }
  func.func @transform_0(%arg0: i32, %arg1: i32) -> (i32, i32) {
    %c0_i32 = arith.constant 0 : i32
    %c0_i32_0 = arith.constant 0 : i32
    return %arg0, %c0_i32 : i32, i32
  }
  func.func @transform_1(%arg0: i32, %arg1: i32) -> (i32, i32) {
    %c0_i32 = arith.constant 0 : i32
    %c0_i32_0 = arith.constant 0 : i32
    return %c0_i32, %arg1 : i32, i32
  }
  func.func @transform_2(%arg0: i32, %arg1: i32) -> (i32, i32) {
    %c0_i32 = arith.constant 0 : i32
    %c0_i32_0 = arith.constant 0 : i32
    return %c0_i32, %arg1 : i32, i32
  }
  func.func @transform_3(%arg0: i32, %arg1: i32) -> (i32, i32) {
    %c0_i32 = arith.constant 0 : i32
    return %arg0, %arg1 : i32, i32
  }
}

</mosaic_0001>

<bundles_post_ra>
// kernel: tpu_custom_call.1
= control target key start
LH: loop header
LB: loop body
LE: loop exit
PB: predicated region body
PF: predicated region fallthrough
CT: control target
= control target key end

     0   :  { %8 = vsyncpa [#allocation3], 0  ;;  %s3308_s0 = inlined_call_operand.vmem [shape: f32[288,2], index: 0, kind: input, shape index: {}]   ;;  %s3309_s1 = inlined_call_operand.vmem [shape: f32[2,128], index: 1, kind: input, shape index: {}]   ;;  %s3310_s2 = inlined_call_operand.vmem [shape: f32[1,128], index: 2, kind: input, shape index: {}]   ;;  %s3311_s3 = inlined_call_operand.hbm [shape: f32[288,128], index: 3, kind: output, shape index: {}]  }
   0x1   :  { %10 = vsyncpa [#allocation3 + $0x1], 0  ;;  %s2168_s12 = smov 0   ;;  %s2170_s13 = smov 0  }
   0x2   :  { %s2172_s14 = smov 0   ;;  %s2174_s15 = smov 0  }
   0x3   :  { %s2176_s16 = smov 0   ;;  %s2178_s17 = smov 0  }
   0x4 LB: > { %s1789_s18 = sadd.s32 4294967295, %s2137_s17   ;;  %s1790_s19 = sadd.s32 4294967294, %s2137_s17   ;;  %s2137_s17 = sphi %s2178_s17, %s16_s17   ;;  %s2133_s16 = sphi %s2176_s16, %s3338_s16   ;;  %s2129_s15 = sphi %s2174_s15, %s3337_s15   ;;  %s2125_s14 = sphi %s2172_s14, %s3336_s14   ;;  %s2121_s13 = sphi %s2170_s13, %s3335_s13   ;;  %s2117_s12 = sphi %s2168_s12, %s3334_s12  }
   0x5   : > { %s28_s20 = sadd.s32 1, %s2133_s16  ;;  %s115_s21 = sadd.s32 1, %s2125_s14 }
   0x6   : > { %p30_p0 = scmp.ge.s32.totalorder %s28_s20, 3  ;;  %p125_p1 = scmp.ne.s32.totalorder %s2125_s14, %s2121_s13 }
   0x7   : > { %p126_p2 = scmp.eq.s32.totalorder %s1789_s18, 2  ;;  %p131_p3 = scmp.ne.s32.totalorder %s2121_s13, %s2117_s12 }
   0x8   : > { %s3340_s20 = smov (%p30_p0, %s28_s20), 0  ;;  %p132_p5 = scmp.eq.s32.totalorder %s1790_s19, 2 }
   0x9   : > { %p2208_p4 = por %p126_p2, %p125_p1  ;;  %s110_s23 = ssub.s32 %s2133_s16, %s3340_s20 }
   0xa   : > { %p1795_p6 = scmp.ge.s32.totalorder %s2137_s17, 1  ;;  %p113_p7 = scmp.eq.s32.totalorder %s110_s23, 0 }
   0xb   : > { %p2215_p8 = por %p132_p5, %p131_p3  ;;  %p172_p9 = scmp.lt.s32.totalorder %s2137_s17, 4 }
   0xc   : > { %s2221_s25 = scalar_select %p113_p7, %s2125_s14, %s115_s21  }
   0xd   : > { %p173_p10 = pnand %p1795_p6, %p172_p9 }
   0xe   : > { %v229_v0 = vld [vmem:[%s3309_s1] sm:$0x3] (!%p173_p10)  ;;  %vm274_vm0 = vcmask (!%p173_p10), 1041408   ;;  %s203_s28 = smul.u32 (!%p173_p10), 12, %s2129_s15  ;;  %vm237_vm1 = vcmask (!%p173_p10), 15360   ;;  %s200_s8 = sand.u32 (!%p173_p10), 1, %s2121_s13  }
   0xf   : > { %176 = sbr.rel (%p173_p10) target bundleno = 593 (0x251), region = 32  ;;  %1876 = vmatprep.subr.msk.mxu0 (!%p173_p10), %vm274_vm0, %v229_v0  ;;  %1896 = vmatprep.subr.msk.mxu1 (!%p173_p10), %vm274_vm0, %v229_v0  ;;  %v2245_v13 = vld [vmem:[%s3310_s2] ss:$0 sm:$0xff] (!%p173_p10)  ;;  %v2139_v57 = vmov (!%p173_p10), 683565275  }
  0x10   : > { %1877 = vmatpush3.msk.msra.mxu0 (!%p173_p10), %vm274_vm0, %v229_v0  ;;  %1897 = vmatpush3.msk.msra.mxu1 (!%p173_p10), %vm274_vm0, %v229_v0  ;;  %p204_p11 = scmp.lt.s32.totalorder (!%p173_p10), %s203_s28, 35  ;;  %v2140_v61 = vmov (!%p173_p10), 2475754826   ;;  %v2141_v63 = vmov (!%p173_p10), 2131351028   ;;  %s2537_s9 = smul.u32 (!%p173_p10), 96, %s200_s8 }
  0x11   : > { %s1862_s19 = smul.u32 (!%p173_p10), 1536, %s2129_s15  ;;  %s3262_s15 = scalar_lea.sflag (!%p173_p10), [#allocation3], %s200_s8 }
  0x12   : > { %s2576_s10 = scalar_lea.vmem (!%p173_p10), [#allocation2], %s2537_s9 }
  0x13   : > { %s1690_s21 = sshll.u32 (!%p173_p10), %s2576_s10, 4  ;;  %s3254_s27 = scalar_lea.hbm (!%p173_p10), %s3311_s3, %s1862_s19  ;;  %s3257_s21 = int_to_ptr.vmem [resolvable:$true] %s1690_s21 }
  0x16   : > { %s3342_s28 = smov (!%p204_p11, %s203_s28), 35 }
  0x17   : > { %s1796_s29 = sshll.u32 %s3342_s28, 3  ;;  %s2059_s28 = scalar_lea.vmem %s3257_s21, 1536 }
  0x18   : > { %s207_s5 = scalar_lea.vmem %s3308_s0, %s1796_s29  ;;  %p2060_p12 = scmp.ne.s32.totalorder %s3257_s21, %s2059_s28 }
  0x19   : > { %v217_v1 = vld [vmem:[%s207_s5] sm:$0xff]  ;;  %v223_v2 = vld [vmem:[%s207_s5 + $0x30] sm:$0xff]  ;;  %v218_v3 = vld [vmem:[%s207_s5 + $0x8] sm:$0xff]  ;;  %s2145_s29 = smov [#allocation2]  }
  0x1a   : > { %1878 = vmatprep.mubr.msk.f32.mxu0 %vm237_vm1, %v217_v1  ;;  %1887 = vmatprep.mubr.msk.f32.mxu1 %vm237_vm1, %v223_v2  ;;  %v224_v4 = vld [vmem:[%s207_s5 + $0x38] sm:$0xff]  ;;  %v219_v5 = vld [vmem:[%s207_s5 + $0x10] sm:$0xff]  ;;  %v225_v6 = vld [vmem:[%s207_s5 + $0x40] sm:$0xff]  ;;  %v2142_v1 = vmov 2102212464   ;;  %p2061_p13 = pnand %p2060_p12, %p2208_p4  ;;  %s2063_s30 = sshll.u32 %s2145_s29, 4  ;;  %s2064_s30 = int_to_ptr.vmem [resolvable:$false] %s2063_s30 }
  0x1b   : > { %1879 = vmatmul.mubr.msk.f32.vlgmr.msra.gmra.mrb[0].mxu0 %vm237_vm1, %v218_v3  ;;  %1888 = vmatmul.mubr.msk.f32.vlgmr.msra.gmra.mrb[0].mxu1 %vm237_vm1, %v224_v4  ;;  %v220_v7 = vld [vmem:[%s207_s5 + $0x18] sm:$0xff]  ;;  %v226_v8 = vld [vmem:[%s207_s5 + $0x48] sm:$0xff]  ;;  %v221_v9 = vld [vmem:[%s207_s5 + $0x20] sm:$0xff]  ;;  %v2143_v3 = vmov 920167782   ;;  %s2065_s4 = scalar_lea.vmem %s2064_s30, 3072  ;;  %p2066_p1 = scmp.lt.s32.totalorder %s3257_s21, %s2064_s30 }
  0x1c   : > { %1881 = vmatprep.mubr.msk.f32.mxu0 %vm237_vm1, %v219_v5  ;;  %1890 = vmatprep.mubr.msk.f32.mxu1 %vm237_vm1, %v225_v6  ;;  %v227_v10 = vld [vmem:[%s207_s5 + $0x50] sm:$0xff]  ;;  %v222_v11 = vld [vmem:[%s207_s5 + $0x28] sm:$0xff]  ;;  %v228_v12 = vld [vmem:[%s207_s5 + $0x58] sm:$0xff]  ;;  %p2062_p0 = pneg %p2061_p13  ;;  %p2067_p2 = scmp.lt.s32.totalorder %s2065_s4, %s2059_s28 }
  0x1e   : > { %p2068_p3 = por %p2067_p2, %p2066_p1 }
  0x1f   : > { %1882 = vmatmul.mubr.msk.f32.gmra.mrb[2].mxu0 %vm237_vm1, %v220_v7  ;;  %1891 = vmatmul.mubr.msk.f32.gmra.mrb[2].mxu1 %vm237_vm1, %v226_v8 }
  0x20   : > { %1884 = vmatprep.mubr.msk.f32.mxu0 %vm237_vm1, %v221_v9  ;;  %1893 = vmatprep.mubr.msk.f32.mxu1 %vm237_vm1, %v227_v10  ;;  %v2144_v10 = vmov 1326507024   ;;  %p2069_p5 = pnand %p2068_p3, %p2062_p0 }
  0x23   : > { %1885 = vmatmul.mubr.msk.f32.gmra.mrb[4].mxu0 %vm237_vm1, %v222_v11  ;;  %1894 = vmatmul.mubr.msk.f32.gmra.mrb[4].mxu1 %vm237_vm1, %v228_v12 }
  0xee   : > { %v1880_v14 = vpop.f32.mrb[0].mxu0  ;;  %v1889_v15 = vpop.f32.mrb[0].mxu1 }
  0xef   : > { %v350_v16 = vadd.f32 %v1880_v14, %v2245_v13  ;;  %v380_v17 = vadd.f32 %v1889_v15, %v2245_v13  ;;  %v344_v18 = vpop.f32.mrb[1].mxu0  ;;  %v374_v19 = vpop.f32.mrb[1].mxu1 }
  0xf0   : > { %v345_v20 = vadd.f32 %v2245_v13, %v344_v18  ;;  %v375_v41 = vadd.f32 %v2245_v13, %v374_v19 }
  0xf1   : > { %v2250_v21 = vmul.f32 30.0, %v350_v16  ;;  %v2252_v22 = vmul.f32 30.0, %v380_v17 }
  0xf2   : > { %v2254_v23 = vmul.f32 30.0, %v345_v20  ;;  %v2256_v24 = vpop.f32.mrb[2].mxu0  ;;  %v2258_v25 = vpop.f32.mrb[2].mxu1  ;;  %v2275_v51 = vmul.f32 30.0, %v375_v41 }
  0xf3   : > { %v519_v26 = vand.u32 2147483647, %v2250_v21  ;;  %v522_v27 = vand.u32 2139095040, %v2250_v21  ;;  %v2262_v28 = vpop.f32.mrb[3].mxu0  ;;  %v1143_v29 = vand.u32 2147483647, %v2252_v22 }
  0xf4   : > { %v1146_v30 = vand.u32 2139095040, %v2252_v22  ;;  %v418_v35 = vand.u32 2139095040, %v2254_v23  ;;  %v415_v44 = vand.u32 2147483647, %v2254_v23  ;;  %v2273_v46 = vpop.f32.mrb[3].mxu1  ;;  %vm521_vm15 = vcmp.lt.s32.totalorder %v2250_v21, 0 }
  0xf5   : > { %v523_v31 = vshrl.u32 %v522_v27, 23  ;;  %v526_v32 = vand.u32 8388607, %v519_v26  ;;  %v1150_v34 = vand.u32 8388607, %v1143_v29 }
  0xf6   : > { %v1147_v33 = vshrl.u32 %v1146_v30, 23  ;;  %v419_v38 = vshrl.u32 %v418_v35, 23  ;;  %v2283_v54 = vand.u32 8388607, %v415_v44  ;;  %vm2362_vm14 = vcmp.le.f32.partialorder %v519_v26, 0.7853982 }
  0xf7   : > { %v1815_v36 = vadd.s32 4294967169, %v523_v31  ;;  %v527_v39 = vor.u32 8388608, %v526_v32  ;;  %v1151_v42 = vor.u32 8388608, %v1150_v34 }
  0xf8   : > { %v1839_v37 = vadd.s32 4294967169, %v1147_v33  ;;  %v1811_v45 = vadd.s32 4294967169, %v419_v38 }
  0xf9   : > { %v529_v40 = vadd.s32 1, %v1815_v36  ;;  %v2277_v52 = vshll.u32 %v527_v39, 8  ;;  %v2279_v53 = vshll.u32 %v1151_v42, 8 }
  0xfa   : > { %v1153_v43 = vadd.s32 1, %v1839_v37  ;;  %v2285_v55 = vadd.s32 1, %v1811_v45 }
  0xfb   : > { %vm530_vm2 = vcmp.gt.s32.totalorder %v529_v40, 0 }
  0xfc   : > { %v531_v47 = vsel %vm530_vm2, %v529_v40, 0  ;;  %vm1154_vm3 = vcmp.gt.s32.totalorder %v1153_v43, 0  ;;  %vm426_vm8 = vcmp.gt.s32.totalorder %v2285_v55, 0 }
  0xfd   : > { %v532_v48 = vshrl.u32 %v531_v47, 5  ;;  %v533_v49 = vand.u32 31, %v531_v47  ;;  %v1155_v50 = vsel %vm1154_vm3, %v1153_v43, 0 }
  0xfe   : > { %v2288_v59 = vshrl.u32 %v1155_v50, 5  ;;  %v1157_v60 = vand.u32 31, %v1155_v50 }
  0xff   : > { %v534_v56 = vsub.s32 32, %v533_v49  ;;  %v536_v58 = vshll.u32 %v2139_v57, %v533_v49  ;;  %v539_v62 = vshll.u32 %v2140_v61, %v533_v49  ;;  %v542_v0 = vshll.u32 %v2141_v63, %v533_v49 }
 0x100   : > { %v545_v2 = vshll.u32 %v2142_v1, %v533_v49  ;;  %v548_v4 = vshll.u32 %v2143_v3, %v533_v49  ;;  %vm551_vm4 = vcmp.lt.s32.totalorder %v532_v48, 1  ;;  %vm552_vm5 = vcmp.lt.s32.totalorder %v532_v48, 2 }
 0x101   : > { %v537_v5 = vshrl.u32 %v2140_v61, %v534_v56  ;;  %v540_v6 = vshrl.u32 %v2141_v63, %v534_v56  ;;  %v543_v7 = vshrl.u32 %v2142_v1, %v534_v56  ;;  %v535_v8 = vshrl.u32 %v2139_v57, %v534_v56 }
 0x102   : > { %v546_v9 = vshrl.u32 %v2143_v3, %v534_v56  ;;  %v549_v11 = vshrl.u32 %v2144_v10, %v534_v56  ;;  %v1158_v16 = vsub.s32 32, %v1157_v60  ;;  %vm553_vm6 = vcmp.lt.s32.totalorder %v532_v48, 3 }
 0x103   : > { %v538_v12 = vor.u32 %v537_v5, %v536_v58  ;;  %v541_v14 = vor.u32 %v540_v6, %v539_v62  ;;  %v544_v15 = vor.u32 %v543_v7, %v542_v0  ;;  %vm554_vm7 = vcmp.lt.s32.totalorder %v532_v48, 4 }
 0x104   : > { %v547_v17 = vor.u32 %v546_v9, %v545_v2  ;;  %v550_v18 = vor.u32 %v549_v11, %v548_v4  ;;  %v1160_v34 = vshll.u32 %v2139_v57, %v1157_v60  ;;  %v1161_v37 = vshrl.u32 %v2140_v61, %v1158_v16 }
 0x105   : > { %v555_v19 = vsel %vm551_vm4, %v535_v8, %v538_v12  ;;  %v556_v20 = vsel %vm554_vm7, %v544_v15, 2102212464  ;;  %v559_v27 = vsel %vm551_vm4, %v538_v12, %v541_v14  ;;  %v563_v30 = vsel %vm551_vm4, %v541_v14, %v544_v15 }
 0x106   : > { %v557_v31 = vsel %vm553_vm6, %v541_v14, %v556_v20  ;;  %v560_v32 = vsel %vm554_vm7, %v547_v17, 920167782  ;;  %v564_v33 = vsel %vm554_vm7, %v550_v18, 1326507024  ;;  %v1163_v38 = vshll.u32 %v2140_v61, %v1157_v60 }
 0x107   : > { %v561_v35 = vsel %vm553_vm6, %v544_v15, %v560_v32  ;;  %v565_v36 = vsel %vm553_vm6, %v547_v17, %v564_v33  ;;  %v558_v39 = vsel %vm552_vm5, %v555_v19, %v557_v31  ;;  %v1164_v42 = vshrl.u32 %v2141_v63, %v1158_v16 }
 0x108   : > { %v562_v40 = vsel %vm552_vm5, %v559_v27, %v561_v35  ;;  %v566_v41 = vsel %vm552_vm5, %v563_v30, %v565_v36  ;;  %v1162_v50 = vor.u32 %v1161_v37, %v1160_v34  ;;  %v1166_v58 = vshll.u32 %v2141_v63, %v1157_v60 }
 0x109   : > { %v2312_v43 = vmul.u32.u64.low %v2277_v52, %v566_v41  ;;  %v2313_v45 = vmul.u32.u64.high %v2277_v52, %v566_v41, %v2312_v43  ;;  %v2316_v47 = vmul.u32.u64.low %v2277_v52, %v562_v40  ;;  %v2317_v49 = vmul.u32.u64.high %v2277_v52, %v562_v40, %v2316_v47 }
 0x10a   : > { %v1165_v56 = vor.u32 %v1164_v42, %v1163_v38  ;;  %v1167_v62 = vshrl.u32 %v2142_v1, %v1158_v16  ;;  %v1159_v48 = vshrl.u32 %v2139_v57, %v1158_v16  ;;  %v1169_v0 = vshll.u32 %v2142_v1, %v1157_v60  ;;  %v2352_v38 = vpop.f32.mrb[4].mxu0 }
 0x10b   : > { %v1170_v2 = vshrl.u32 %v2143_v3, %v1158_v16  ;;  %v1173_v4 = vshrl.u32 %v2144_v10, %v1158_v16  ;;  %v574_v5 = vmul.u32 %v2277_v52, %v558_v39  ;;  %v1172_v7 = vshll.u32 %v2143_v3, %v1157_v60 }
 0x10c   : > { %v1168_v6 = vor.u32 %v1167_v62, %v1166_v58  ;;  %vm1175_vm9 = vcmp.lt.s32.totalorder %v2288_v59, 1  ;;  %vm576_vm10 = vc.u32 %v2313_v45, %v2316_v47  ;;  %v577_v8 = vadd.s32 1, %v2317_v49 }
 0x10d   : > { %v1171_v9 = vor.u32 %v1170_v2, %v1169_v0  ;;  %vm1176_vm11 = vcmp.lt.s32.totalorder %v2288_v59, 2  ;;  %v1174_v11 = vor.u32 %v1173_v4, %v1172_v7  ;;  %vm1177_vm12 = vcmp.lt.s32.totalorder %v2288_v59, 3 }
 0x10e   : > { %vm1178_vm13 = vcmp.lt.s32.totalorder %v2288_v59, 4  ;;  %v1183_v12 = vsel %vm1175_vm9, %v1162_v50, %v1165_v56  ;;  %v578_v52 = vsel %vm576_vm10, %v577_v8, %v2317_v49  ;;  %v1187_v15 = vsel %vm1175_vm9, %v1165_v56, %v1168_v6 }
 0x10f   : > { %v1180_v14 = vsel %vm1178_vm13, %v1168_v6, 2102212464  ;;  %v1184_v60 = vsel %vm1178_vm13, %v1171_v9, 920167782  ;;  %v579_v16 = vadd.s32 %v578_v52, %v574_v5  ;;  %v1179_v17 = vsel %vm1175_vm9, %v1159_v48, %v1162_v50 }
 0x110   : > { %v1185_v18 = vsel %vm1177_vm12, %v1168_v6, %v1184_v60  ;;  %v1188_v19 = vsel %vm1178_vm13, %v1174_v11, 1326507024  ;;  %v1181_v20 = vsel %vm1177_vm12, %v1165_v56, %v1180_v14  ;;  %v427_v31 = vsel %vm426_vm8, %v2285_v55, 0 }
 0x111   : > { %v1186_v27 = vsel %vm1176_vm11, %v1183_v12, %v1185_v18  ;;  %v1189_v30 = vsel %vm1177_vm12, %v1171_v9, %v1188_v19  ;;  %v580_v32 = vadd.s32 536870912, %v579_v16  ;;  %v1182_v40 = vsel %vm1176_vm11, %v1179_v17, %v1181_v20 }
 0x112   : > { %v1190_v33 = vsel %vm1176_vm11, %v1187_v15, %v1189_v30  ;;  %v2344_v34 = vmul.u32.u64.low %v2279_v53, %v1186_v27  ;;  %v2345_v35 = vmul.u32.u64.high %v2279_v53, %v1186_v27, %v2344_v34  ;;  %v429_v55 = vand.u32 31, %v427_v31 }
 0x113   : > { %v2349_v36 = vmul.u32.u64.low %v2279_v53, %v1190_v33  ;;  %v2350_v37 = vmul.u32.u64.high %v2279_v53, %v1190_v33, %v2349_v36  ;;  %v581_v39 = vshrl.u32 %v580_v32, 30  ;;  %v1039_v41 = vand.u32 2147483647, %v2275_v51 }
 0x114   : > { %v423_v42 = vor.u32 8388608, %v2283_v54  ;;  %v1042_v43 = vand.u32 2139095040, %v2275_v51  ;;  %v1201_v50 = vadd.s32 1, %v2345_v35  ;;  %v430_v56 = vsub.s32 32, %v429_v55 }
 0x115   : > { %v582_v49 = vshll.u32 %v581_v39, 30  ;;  %v1198_v59 = vmul.u32 %v2279_v53, %v1182_v40  ;;  %vm1200_vm0 = vc.u32 %v2350_v37, %v2344_v34  ;;  %v605_v62 = vsub.s32 4, %v581_v39 }
 0x116   : > { %v1202_v48 = vsel %vm1200_vm0, %v1201_v50, %v2345_v35  ;;  %v2375_v0 = vand.u32 8388607, %v1039_v41  ;;  %v433_v2 = vshrl.u32 %v2140_v61, %v430_v56  ;;  %v2378_v4 = vshll.u32 %v423_v42, 8 }
 0x117   : > { %v2370_v54 = vsub.s32 %v579_v16, %v582_v49  ;;  %v1203_v26 = vadd.s32 %v1202_v48, %v1198_v59  ;;  %v1043_v5 = vshrl.u32 %v1042_v43, 23  ;;  %v575_v53 = vadd.s32 %v2316_v47, %v2313_v45 }
 0x118   : > { %v436_v7 = vshrl.u32 %v2141_v63, %v430_v56  ;;  %v439_v8 = vshrl.u32 %v2142_v1, %v430_v56  ;;  %v2385_v11 = vshrl.u32 %v427_v31, 5  ;;  %v432_v12 = vshll.u32 %v2139_v57, %v429_v55 }
 0x119   : > { %v585_v6 = vsub.s32 0, %v2370_v54  ;;  %v1204_v9 = vadd.s32 536870912, %v1203_v26  ;;  %v435_v52 = vshll.u32 %v2140_v61, %v429_v55  ;;  %v606_v60 = vsel %vm521_vm15, %v605_v62, %v581_v39 }
 0x11a   : > { %v438_v45 = vshll.u32 %v2141_v63, %v429_v55  ;;  %v442_v47 = vshrl.u32 %v2143_v3, %v430_v56  ;;  %v434_v16 = vor.u32 %v433_v2, %v432_v12  ;;  %v441_v17 = vshll.u32 %v2142_v1, %v429_v55 }
 0x11b   : > { %v1816_v14 = vmin.u32 %v585_v6, %v2370_v54  ;;  %v2394_v15 = vshrl.u32 %v1204_v9, 30  ;;  %v445_v18 = vshrl.u32 %v2144_v10, %v430_v56  ;;  %v437_v20 = vor.u32 %v436_v7, %v435_v52 }
 0x11c   : > { %v440_v27 = vor.u32 %v439_v8, %v438_v45  ;;  %v444_v30 = vshll.u32 %v2143_v3, %v429_v55  ;;  %v443_v32 = vor.u32 %v442_v47, %v441_v17  ;;  %vm447_vm1 = vcmp.lt.s32.totalorder %v2385_v11, 1 }
 0x11d   : > { %v587_v19 = vclz %v1816_v14  ;;  %v1206_v31 = vshll.u32 %v2394_v15, 30  ;;  %v1835_v33 = vadd.s32 4294967169, %v1043_v5  ;;  %v608_v36 = vsel %vm2362_vm14, 0, %v606_v60 }
 0x11e   : > { %v446_v39 = vor.u32 %v445_v18, %v444_v30  ;;  %vm450_vm2 = vcmp.lt.s32.totalorder %v2385_v11, 4  ;;  %vm448_vm3 = vcmp.lt.s32.totalorder %v2385_v11, 2  ;;  %vm449_vm4 = vcmp.lt.s32.totalorder %v2385_v11, 3 }
 0x11f   : > { %v1817_v35 = vadd.s32 4294967294, %v587_v19  ;;  %v2404_v40 = vsub.s32 %v1203_v26, %v1206_v31  ;;  %v456_v55 = vsel %vm450_vm2, %v443_v32, 920167782  ;;  %v431_v42 = vshrl.u32 %v2139_v57, %v430_v56 }
 0x120   : > { %v455_v43 = vsel %vm447_vm1, %v434_v16, %v437_v20  ;;  %v457_v49 = vsel %vm449_vm4, %v440_v27, %v456_v55  ;;  %v612_v59 = vadd.s32 3, %v608_v36  ;;  %v459_v48 = vsel %vm447_vm1, %v437_v20, %v440_v27  ;;  %v2448_v36 = vpop.f32.mrb[4].mxu1 }
 0x121   : > { %vm1818_vm5 = vcmp.lt.s32.totalorder %v1817_v35, 0  ;;  %v1209_v62 = vsub.s32 0, %v2404_v40  ;;  %vm1145_vm6 = vcmp.lt.s32.totalorder %v2252_v22, 0  ;;  %v452_v56 = vsel %vm450_vm2, %v440_v27, 2102212464 }
 0x122   : > { %v590_v50 = vsel %vm1818_vm5, 0, %v1817_v35  ;;  %v460_v5 = vsel %vm450_vm2, %v446_v39, 1326507024  ;;  %v458_v8 = vsel %vm448_vm3, %v455_v43, %v457_v49  ;;  %v1049_v60 = vadd.s32 1, %v1835_v33 }
 0x123   : > { %v591_v26 = vsub.s32 32, %v590_v50  ;;  %v595_v2 = vsub.s32 4294967266, %v590_v50  ;;  %v592_v6 = vshll.u32 %v2370_v54, %v590_v50  ;;  %v1840_v7 = vmin.u32 %v1209_v62, %v2404_v40 }
 0x124   : > { %v461_v9 = vsel %vm449_vm4, %v443_v32, %v460_v5  ;;  %v1229_v47 = vsub.s32 4, %v2394_v15  ;;  %v451_v54 = vsel %vm447_vm1, %v431_v42, %v434_v16  ;;  %v453_v17 = vsel %vm449_vm4, %v437_v20, %v452_v56 }
 0x125   : > { %v593_v12 = vshrl.u32 %v575_v53, %v591_v26  ;;  %v596_v52 = vadd.s32 127, %v595_v2  ;;  %v462_v14 = vsel %vm448_vm3, %v459_v48, %v461_v9  ;;  %v1211_v45 = vclz %v1840_v7 }
 0x126   : > { %v2437_v27 = vmul.u32.u64.low %v2378_v4, %v462_v14  ;;  %v2438_v30 = vmul.u32.u64.high %v2378_v4, %v462_v14, %v2437_v27  ;;  %v2441_v31 = vmul.u32.u64.low %v2378_v4, %v458_v8  ;;  %v2442_v32 = vmul.u32.u64.high %v2378_v4, %v458_v8, %v2441_v31 }
 0x127   : > { %v594_v18 = vor.u32 %v593_v12, %v592_v6  ;;  %v597_v19 = vshll.u32 %v596_v52, 23  ;;  %v1841_v53 = vadd.s32 4294967294, %v1211_v45  ;;  %vm1050_vm7 = vcmp.gt.s32.totalorder %v1049_v60, 0 }
 0x128   : > { %v1199_v16 = vadd.s32 %v2344_v34, %v2350_v37  ;;  %v1047_v35 = vor.u32 8388608, %v2375_v0  ;;  %v1051_v20 = vsel %vm1050_vm7, %v1049_v60, 0  ;;  %v2450_v39 = vand.u32 3, %v612_v59 }
 0x129   : > { %v598_v33 = vor.u32 4788187, %v597_v19  ;;  %vm1842_vm8 = vcmp.lt.s32.totalorder %v1841_v53, 0  ;;  %v454_v55 = vsel %vm448_vm3, %v451_v54, %v453_v17  ;;  %v1053_v42 = vand.u32 31, %v1051_v20 }
 0x12a   : > { %v601_v49 = vcvt.s32.f32 %v594_v18  ;;  %v1214_v50 = vsel %vm1842_vm8, 0, %v1841_v53  ;;  %vm472_vm9 = vc.u32 %v2438_v30, %v2441_v31  ;;  %v2459_v37 = vsel %vm1145_vm6, %v1229_v47, %v2394_v15 }
 0x12b   : > { %v599_v43 = vand.u32 2147483647, %v598_v33  ;;  %v1215_v62 = vsub.s32 32, %v1214_v50  ;;  %v1219_v34 = vsub.s32 4294967266, %v1214_v50  ;;  %v473_v0 = vadd.s32 1, %v2442_v32 }
 0x12c   : > { %v470_v11 = vmul.u32 %v2378_v4, %v454_v55  ;;  %v2463_v48 = vshrl.u32 %v1051_v20, 5  ;;  %v1054_v26 = vsub.s32 32, %v1053_v42  ;;  %v1216_v2 = vshll.u32 %v2404_v40, %v1214_v50 }
 0x12d   : > { %v602_v59 = vmul.f32 %v601_v49, %v599_v43  ;;  %v1217_v56 = vshrl.u32 %v1199_v16, %v1215_v62  ;;  %v1220_v5 = vadd.s32 127, %v1219_v34  ;;  %v474_v6 = vsel %vm472_vm9, %v473_v0, %v2442_v32 }
 0x12e   : > { %v475_v8 = vadd.s32 %v474_v6, %v470_v11  ;;  %v1056_v9 = vshll.u32 %v2139_v57, %v1053_v42  ;;  %v1057_v15 = vshrl.u32 %v2140_v61, %v1054_v26  ;;  %v1059_v14 = vshll.u32 %v2140_v61, %v1053_v42 }
 0x12f   : > { %v603_v7 = vxor.u32 2147483648, %v602_v59  ;;  %v1218_v12 = vor.u32 %v1217_v56, %v1216_v2  ;;  %v1221_v52 = vshll.u32 %v1220_v5, 23  ;;  %v1060_v4 = vshrl.u32 %v2141_v63, %v1054_v26 }
 0x130   : > { %v476_v40 = vadd.s32 536870912, %v475_v8  ;;  %v1062_v45 = vshll.u32 %v2141_v63, %v1053_v42  ;;  %v1063_v47 = vshrl.u32 %v2142_v1, %v1054_v26  ;;  %v1058_v18 = vor.u32 %v1057_v15, %v1056_v9 }
 0x131   : > { %v604_v60 = vsel %vm521_vm15, %v603_v7, %v602_v59  ;;  %v1222_v17 = vor.u32 4788187, %v1221_v52  ;;  %v1065_v19 = vshll.u32 %v2142_v1, %v1053_v42  ;;  %v1225_v27 = vcvt.s32.f32 %v1218_v12 }
 0x132   : > { %v607_v54 = vsel %vm2362_vm14, %v2250_v21, %v604_v60  ;;  %v2479_v53 = vshrl.u32 %v476_v40, 30  ;;  %v1066_v32 = vshrl.u32 %v2143_v3, %v1054_v26  ;;  %v1061_v16 = vor.u32 %v1060_v4, %v1059_v14 }
 0x133   : > { %2010 = vcosq.f32 %v607_v54  ;;  %v1223_v33 = vand.u32 2147483647, %v1222_v17  ;;  %v1069_v20 = vshrl.u32 %v2144_v10, %v1054_v26  ;;  %vm2486_vm10 = vcmp.le.f32.partialorder %v1143_v29, 0.7853982 }
 0x134   : > { %2012 = vsinq.f32 %v607_v54  ;;  %v478_v55 = vshll.u32 %v2479_v53, 30  ;;  %v1067_v43 = vor.u32 %v1066_v32, %v1065_v19  ;;  %v1064_v50 = vor.u32 %v1063_v47, %v1062_v45 }
 0x135   : > { %v1226_v49 = vmul.f32 %v1225_v27, %v1223_v33  ;;  %v1068_v62 = vshll.u32 %v2143_v3, %v1053_v42  ;;  %vm618_vm11 = vcmp.eq.s32.totalorder %v2450_v39, 2  ;;  %v1232_v34 = vsel %vm2486_vm10, 0, %v2459_v37 }
 0x136   : > { %v2495_v0 = vsub.s32 %v475_v8, %v478_v55  ;;  %vm1071_vm12 = vcmp.lt.s32.totalorder %v2463_v48, 1  ;;  %v2498_v59 = vshll.u32 %v1047_v35, 8  ;;  %vm615_vm13 = vcmp.eq.s32.totalorder %v2450_v39, 0 }
 0x137   : > { %v1227_v29 = vxor.u32 2147483648, %v1226_v49  ;;  %v1070_v11 = vor.u32 %v1069_v20, %v1068_v62  ;;  %vm1074_vm14 = vcmp.lt.s32.totalorder %v2463_v48, 4  ;;  %v1079_v42 = vsel %vm1071_vm12, %v1058_v18, %v1061_v16 }
 0x138   : > { %vm614_vm15 = vcmp.lt.s32.totalorder %v2450_v39, 2  ;;  %v481_v2 = vsub.s32 0, %v2495_v0  ;;  %v1055_v37 = vshrl.u32 %v2139_v57, %v1054_v26  ;;  %vm1073_vm0 = vcmp.lt.s32.totalorder %v2463_v48, 3 }
 0x139   : > { %v1080_v35 = vsel %vm1074_vm14, %v1067_v43, 920167782  ;;  %vm611_vm1 = vweird.f32 %v2250_v21  ;;  %v1228_v56 = vsel %vm1145_vm6, %v1227_v29, %v1226_v49  ;;  %vm417_vm2 = vcmp.lt.s32.totalorder %v2254_v23, 0 }
 0x13a   : > { %vm1072_vm3 = vcmp.lt.s32.totalorder %v2463_v48, 2  ;;  %v1076_v5 = vsel %vm1074_vm14, %v1064_v50, 2102212464  ;;  %v1081_v26 = vsel %vm1073_vm0, %v1064_v50, %v1080_v35  ;;  %v1231_v6 = vsel %vm2486_vm10, %v2252_v22, %v1228_v56 }
 0x13b   : > { %v1812_v7 = vmin.u32 %v481_v2, %v2495_v0  ;;  %v1082_v8 = vsel %vm1072_vm3, %v1079_v42, %v1081_v26  ;;  %v1083_v9 = vsel %vm1071_vm12, %v1061_v16, %v1064_v50  ;;  %2014 = vcosq.f32 %v1231_v6 }
 0x13c   : > { %v1084_v15 = vsel %vm1074_vm14, %v1070_v11, 1326507024  ;;  %v2531_v12 = vmul.u32.u64.low %v2498_v59, %v1082_v8  ;;  %v2532_v52 = vmul.u32.u64.high %v2498_v59, %v1082_v8, %v2531_v12  ;;  %2016 = vsinq.f32 %v1231_v6 }
 0x13d   : > { %v2011_v14 = vpop.eup %2010  ;;  %v483_v4 = vclz %v1812_v7  ;;  %v1075_v60 = vsel %vm1071_vm12, %v1055_v37, %v1058_v18  ;;  %v1077_v40 = vsel %vm1073_vm0, %v1061_v16, %v1076_v5  ;;  %v1236_v54 = vadd.s32 3, %v1232_v34 }
 0x13e   : > { %v2013_v45 = vpop.eup %2012  ;;  %v619_v47 = vxor.u32 2147483648, %v2011_v14  ;;  %v501_v17 = vsub.s32 4, %v2479_v53  ;;  %v1085_v19 = vsel %vm1073_vm0, %v1067_v43, %v1084_v15  ;;  %v360_v20 = vadd.f32 %v2256_v24, %v2245_v13  ;;  %v2558_v43 = vpop.f32.mrb[5].mxu0 }
 0x13f   : > { %v616_v27 = vxor.u32 2147483648, %v2013_v45  ;;  %v1813_v32 = vadd.s32 4294967294, %v483_v4  ;;  %v1086_v33 = vsel %vm1072_vm3, %v1083_v9, %v1085_v19  ;;  %v1078_v16 = vsel %vm1072_vm3, %v1075_v60, %v1077_v40 }
 0x140   : > { %v620_v18 = vsel %vm618_vm11, %v619_v47, %v2013_v45  ;;  %v2555_v55 = vmul.u32.u64.low %v2498_v59, %v1086_v33  ;;  %v2556_v58 = vmul.u32.u64.high %v2498_v59, %v1086_v33, %v2555_v55  ;;  %v1097_v50 = vadd.s32 1, %v2532_v52 }
 0x141   : > { %v617_v49 = vsel %vm615_vm13, %v2011_v14, %v616_v27  ;;  %vm1814_vm4 = vcmp.lt.s32.totalorder %v1813_v32, 0  ;;  %v2563_v24 = vmul.f32 30.0, %v360_v20  ;;  %v1237_v48 = vand.u32 3, %v1236_v54 }
 0x142   : > { %v621_v62 = vsel %vm614_vm15, %v617_v49, %v620_v18  ;;  %v471_v34 = vadd.s32 %v2441_v31, %v2438_v30  ;;  %v486_v29 = vsel %vm1814_vm4, 0, %v1813_v32  ;;  %vm1235_vm5 = vweird.f32 %v2252_v22 }
 0x143   : > { %v622_v11 = vsel %vm611_vm1, nan, %v621_v62  ;;  %v487_v42 = vsub.s32 32, %v486_v29  ;;  %v491_v2 = vsub.s32 4294967266, %v486_v29  ;;  %v502_v37 = vsel %vm417_vm2, %v501_v17, %v2479_v53 }
 0x144   : > { %1664 = vst [vmem:[%s2576_s10 + $0x8] sm:$0xff] %v622_v11  ;;  %v488_v39 = vshll.u32 %v2495_v0, %v486_v29  ;;  %v1094_v30 = vmul.u32 %v2498_v59, %v1078_v16  ;;  %vm1096_vm6 = vc.u32 %v2556_v58, %v2531_v12  ;;  %v727_v21 = vand.u32 2147483647, %v2563_v24 }
 0x145   : > { %v489_v31 = vshrl.u32 %v471_v34, %v487_v42  ;;  %v492_v35 = vadd.s32 127, %v491_v2  ;;  %v1098_v56 = vsel %vm1096_vm6, %v1097_v50, %v2532_v52  ;;  %v730_v5 = vand.u32 2139095040, %v2563_v24  ;;  %v2015_v53 = vpop.eup %2014 }
 0x146   : > { %vm1239_vm7 = vcmp.eq.s32.totalorder %v1237_v48, 0  ;;  %vm2588_vm8 = vcmp.le.f32.partialorder %v415_v44, 0.7853982  ;;  %v1099_v0 = vadd.s32 %v1098_v56, %v1094_v30  ;;  %v390_v59 = vadd.f32 %v2258_v25, %v2245_v13  ;;  %v2017_v6 = vpop.eup %2016 }
 0x147   : > { %v1243_v7 = vxor.u32 2147483648, %v2015_v53  ;;  %v490_v8 = vor.u32 %v489_v31, %v488_v39  ;;  %v493_v9 = vshll.u32 %v492_v35, 23  ;;  %v731_v15 = vshrl.u32 %v730_v5, 23 }
 0x148   : > { %v1240_v52 = vxor.u32 2147483648, %v2017_v6  ;;  %vm1242_vm9 = vcmp.eq.s32.totalorder %v1237_v48, 2  ;;  %v504_v14 = vsel %vm2588_vm8, 0, %v502_v37  ;;  %v1100_v4 = vadd.s32 536870912, %v1099_v0 }
 0x149   : > { %v1244_v60 = vsel %vm1242_vm9, %v1243_v7, %v2017_v6  ;;  %v494_v44 = vor.u32 4788187, %v493_v9  ;;  %v1823_v40 = vadd.s32 4294967169, %v731_v15  ;;  %v734_v45 = vand.u32 8388607, %v727_v21 }
 0x14a   : > { %vm1238_vm10 = vcmp.lt.s32.totalorder %v1237_v48, 2  ;;  %v1241_v25 = vsel %vm1239_vm7, %v2015_v53, %v1240_v52  ;;  %v1101_v47 = vshrl.u32 %v1100_v4, 30  ;;  %v2599_v54 = vmul.f32 30.0, %v390_v59 }
 0x14b   : > { %v1245_v17 = vsel %vm1238_vm10, %v1241_v25, %v1244_v60  ;;  %v495_v19 = vand.u32 2147483647, %v494_v44  ;;  %v497_v27 = vcvt.s32.f32 %v490_v8  ;;  %v737_v32 = vadd.s32 1, %v1823_v40 }
 0x14c   : > { %v1246_v33 = vsel %vm1235_vm5, nan, %v1245_v17  ;;  %v508_v20 = vadd.s32 3, %v504_v14  ;;  %v1102_v18 = vshll.u32 %v1101_v47, 30  ;;  %v1125_v16 = vsub.s32 4, %v1101_v47 }
 0x14d   : > { %1670 = vst [vmem:[%s2576_s10 + $0x38] sm:$0xff] %v1246_v33  ;;  %v498_v55 = vmul.f32 %v497_v27, %v495_v19  ;;  %vm1041_vm11 = vcmp.lt.s32.totalorder %v2275_v51, 0  ;;  %v735_v49 = vor.u32 8388608, %v734_v45  ;;  %vm738_vm12 = vcmp.gt.s32.totalorder %v737_v32, 0 }
 0x14e   : > { %v2605_v50 = vsub.s32 %v1099_v0, %v1102_v18  ;;  %v1126_v62 = vsel %vm1041_vm11, %v1125_v16, %v1101_v47  ;;  %v739_v48 = vsel %vm738_vm12, %v737_v32, 0  ;;  %v1351_v34 = vand.u32 2147483647, %v2599_v54 }
 0x14f   : > { %v499_v29 = vxor.u32 2147483648, %v498_v55  ;;  %vm2612_vm13 = vcmp.le.f32.partialorder %v1039_v41, 0.7853982  ;;  %v741_v11 = vand.u32 31, %v739_v48  ;;  %v2616_v42 = vand.u32 3, %v508_v20 }
 0x150   : > { %v1105_v2 = vsub.s32 0, %v2605_v50  ;;  %v1128_v37 = vsel %vm2612_vm13, 0, %v1126_v62  ;;  %v1354_v39 = vand.u32 2139095040, %v2599_v54  ;;  %v1095_v31 = vadd.s32 %v2531_v12, %v2556_v58 }
 0x151   : > { %v500_v30 = vsel %vm417_vm2, %v499_v29, %v498_v55  ;;  %v742_v41 = vsub.s32 32, %v741_v11  ;;  %v2626_v35 = vshll.u32 %v735_v49, 8  ;;  %v2632_v53 = vshrl.u32 %v739_v48, 5 }
 0x152   : > { %v503_v56 = vsel %vm2588_vm8, %v2254_v23, %v500_v30  ;;  %v1836_v5 = vmin.u32 %v1105_v2, %v2605_v50  ;;  %v2636_v0 = vand.u32 8388607, %v1351_v34  ;;  %v2638_v59 = vadd.s32 3, %v1128_v37 }
 0x153   : > { %2018 = vcosq.f32 %v503_v56  ;;  %v745_v12 = vshrl.u32 %v2140_v61, %v742_v41  ;;  %v748_v58 = vshrl.u32 %v2141_v63, %v742_v41  ;;  %v744_v26 = vshll.u32 %v2139_v57, %v741_v11 }
 0x154   : > { %2020 = vsinq.f32 %v503_v56  ;;  %v1107_v6 = vclz %v1836_v5  ;;  %v1355_v7 = vshrl.u32 %v1354_v39, 23  ;;  %v743_v8 = vshrl.u32 %v2139_v57, %v742_v41 }
 0x155   : > { %v747_v9 = vshll.u32 %v2140_v61, %v741_v11  ;;  %v750_v15 = vshll.u32 %v2141_v63, %v741_v11  ;;  %v751_v52 = vshrl.u32 %v2142_v1, %v742_v41  ;;  %v746_v4 = vor.u32 %v745_v12, %v744_v26 }
 0x156   : > { %v1837_v14 = vadd.s32 4294967294, %v1107_v6  ;;  %v753_v60 = vshll.u32 %v2142_v1, %v741_v11  ;;  %v754_v44 = vshrl.u32 %v2143_v3, %v742_v41  ;;  %vm514_vm14 = vcmp.eq.s32.totalorder %v2616_v42, 2  ;;  %v2670_v6 = vpop.f32.mrb[5].mxu1 }
 0x157   : > { %v749_v40 = vor.u32 %v748_v58, %v747_v9  ;;  %v752_v45 = vor.u32 %v751_v52, %v750_v15  ;;  %v756_v25 = vshll.u32 %v2143_v3, %v741_v11  ;;  %v757_v47 = vshrl.u32 %v2144_v10, %v742_v41 }
 0x158   : > { %vm511_vm15 = vcmp.eq.s32.totalorder %v2616_v42, 0  ;;  %vm1838_vm0 = vcmp.lt.s32.totalorder %v1837_v14, 0  ;;  %v755_v17 = vor.u32 %v754_v44, %v753_v60  ;;  %vm759_vm1 = vcmp.lt.s32.totalorder %v2632_v53, 1 }
 0x159   : > { %vm760_vm2 = vcmp.lt.s32.totalorder %v2632_v53, 2  ;;  %vm510_vm3 = vcmp.lt.s32.totalorder %v2616_v42, 2  ;;  %v1110_v19 = vsel %vm1838_vm0, 0, %v1837_v14  ;;  %v758_v27 = vor.u32 %v757_v47, %v756_v25 }
 0x15a   : > { %vm761_vm4 = vcmp.lt.s32.totalorder %v2632_v53, 3  ;;  %vm762_vm5 = vcmp.lt.s32.totalorder %v2632_v53, 4  ;;  %vm507_vm6 = vweird.f32 %v2254_v23  ;;  %v1111_v32 = vsub.s32 32, %v1110_v19 }
 0x15b   : > { %v1115_v33 = vsub.s32 4294967266, %v1110_v19  ;;  %v763_v20 = vsel %vm759_vm1, %v743_v8, %v746_v4  ;;  %v764_v18 = vsel %vm762_vm5, %v752_v45, 2102212464  ;;  %v1112_v16 = vshll.u32 %v2605_v50, %v1110_v19 }
 0x15c   : > { %v767_v55 = vsel %vm759_vm1, %v746_v4, %v749_v40  ;;  %v768_v49 = vsel %vm762_vm5, %v755_v17, 920167782  ;;  %v771_v62 = vsel %vm759_vm1, %v749_v40, %v752_v45  ;;  %v1113_v48 = vshrl.u32 %v1095_v31, %v1111_v32 }
 0x15d   : > { %v1116_v29 = vadd.s32 127, %v1115_v33  ;;  %v769_v11 = vsel %vm761_vm4, %v752_v45, %v768_v49  ;;  %v772_v2 = vsel %vm762_vm5, %v758_v27, 1326507024  ;;  %v2019_v37 = vpop.eup %2018  ;;  %v765_v39 = vsel %vm761_vm4, %v749_v40, %v764_v18 }
 0x15e   : > { %v770_v30 = vsel %vm760_vm2, %v767_v55, %v769_v11  ;;  %v773_v41 = vsel %vm761_vm4, %v755_v17, %v772_v2  ;;  %v1847_v50 = vadd.s32 4294967169, %v1355_v7  ;;  %v2021_v56 = vpop.eup %2020  ;;  %v515_v5 = vxor.u32 2147483648, %v2019_v37 }
 0x15f   : > { %v1114_v12 = vor.u32 %v1113_v48, %v1112_v16  ;;  %v1117_v31 = vshll.u32 %v1116_v29, 23  ;;  %v774_v58 = vsel %vm760_vm2, %v771_v62, %v773_v41  ;;  %v512_v26 = vxor.u32 2147483648, %v2021_v56 }
 0x160   : > { %v2673_v8 = vmul.u32.u64.low %v2626_v35, %v774_v58  ;;  %v2674_v9 = vmul.u32.u64.high %v2626_v35, %v774_v58, %v2673_v8  ;;  %v1361_v15 = vadd.s32 1, %v1847_v50  ;;  %v516_v52 = vsel %vm514_vm14, %v515_v5, %v2021_v56 }
 0x161   : > { %v1118_v7 = vor.u32 4788187, %v1117_v31  ;;  %v766_v14 = vsel %vm760_vm2, %v763_v20, %v765_v39  ;;  %v1359_v4 = vor.u32 8388608, %v2636_v0  ;;  %v513_v60 = vsel %vm511_vm15, %v2019_v37, %v512_v26 }
 0x162   : > { %v2684_v44 = vmul.u32.u64.low %v2626_v35, %v770_v30  ;;  %v2685_v40 = vmul.u32.u64.high %v2626_v35, %v770_v30, %v2684_v44  ;;  %vm1362_vm7 = vcmp.gt.s32.totalorder %v1361_v15, 0  ;;  %v517_v45 = vsel %vm510_vm3, %v513_v60, %v516_v52 }
 0x163   : > { %v1119_v25 = vand.u32 2147483647, %v1118_v7  ;;  %v1121_v47 = vcvt.s32.f32 %v1114_v12  ;;  %v1363_v17 = vsel %vm1362_vm7, %v1361_v15, 0  ;;  %v518_v53 = vsel %vm507_vm6, nan, %v517_v45 }
 0x164   : > { %v2692_v19 = vshrl.u32 %v1363_v17, 5  ;;  %1663 = vst [vmem:[%s2576_s10] sm:$0xff] %v518_v53  ;;  %vm784_vm8 = vc.u32 %v2674_v9, %v2684_v44  ;;  %v1365_v27 = vand.u32 31, %v1363_v17  ;;  %v355_v32 = vadd.f32 %v2245_v13, %v2262_v28 }
 0x165   : > { %v1122_v0 = vmul.f32 %v1121_v47, %v1119_v25  ;;  %v2700_v42 = vand.u32 3, %v2638_v59  ;;  %v782_v33 = vmul.u32 %v2626_v35, %v766_v14  ;;  %v785_v20 = vadd.s32 1, %v2685_v40 }
 0x166   : > { %v2704_v23 = vshll.u32 %v1359_v4, 8  ;;  %v1366_v16 = vsub.s32 32, %v1365_v27  ;;  %v1368_v55 = vshll.u32 %v2139_v57, %v1365_v27  ;;  %vm1383_vm9 = vcmp.lt.s32.totalorder %v2692_v19, 1 }
 0x167   : > { %v1123_v18 = vxor.u32 2147483648, %v1122_v0  ;;  %v786_v49 = vsel %vm784_vm8, %v785_v20, %v2685_v40  ;;  %v1371_v62 = vshll.u32 %v2140_v61, %v1365_v27  ;;  %v1374_v13 = vshll.u32 %v2141_v63, %v1365_v27 }
 0x168   : > { %v1377_v28 = vshll.u32 %v2142_v1, %v1365_v27  ;;  %v787_v59 = vadd.s32 %v786_v49, %v782_v33  ;;  %v1369_v48 = vshrl.u32 %v2140_v61, %v1366_v16  ;;  %v1380_v29 = vshll.u32 %v2143_v3, %v1365_v27 }
 0x169   : > { %v1124_v35 = vsel %vm1041_vm11, %v1123_v18, %v1122_v0  ;;  %v1372_v2 = vshrl.u32 %v2141_v63, %v1366_v16  ;;  %v1375_v37 = vshrl.u32 %v2142_v1, %v1366_v16  ;;  %v1378_v39 = vshrl.u32 %v2143_v3, %v1366_v16 }
 0x16a   : > { %v1127_v11 = vsel %vm2612_vm13, %v2275_v51, %v1124_v35  ;;  %v788_v30 = vadd.s32 536870912, %v787_v59  ;;  %v1370_v41 = vor.u32 %v1369_v48, %v1368_v55  ;;  %v1381_v50 = vshrl.u32 %v2144_v10, %v1366_v16 }
 0x16b   : > { %2022 = vcosq.f32 %v1127_v11  ;;  %v1373_v56 = vor.u32 %v1372_v2, %v1371_v62  ;;  %v1376_v5 = vor.u32 %v1375_v37, %v1374_v13  ;;  %v1379_v12 = vor.u32 %v1378_v39, %v1377_v28 }
 0x16c   : > { %2024 = vsinq.f32 %v1127_v11  ;;  %v789_v31 = vshrl.u32 %v788_v30, 30  ;;  %v1382_v58 = vor.u32 %v1381_v50, %v1380_v29  ;;  %vm1385_vm10 = vcmp.lt.s32.totalorder %v2692_v19, 3 }
 0x16d   : > { %vm1386_vm11 = vcmp.lt.s32.totalorder %v2692_v19, 4  ;;  %v1367_v22 = vshrl.u32 %v2139_v57, %v1366_v16  ;;  %v1391_v8 = vsel %vm1383_vm9, %v1370_v41, %v1373_v56  ;;  %vm1384_vm12 = vcmp.lt.s32.totalorder %v2692_v19, 2  ;;  %v2759_v16 = vld [vmem:[%s3310_s2] ss:$0 sm:$0xff] }
 0x16e   : > { %v1388_v26 = vsel %vm1386_vm11, %v1376_v5, 2102212464  ;;  %v1392_v15 = vsel %vm1386_vm11, %v1379_v12, 920167782  ;;  %v790_v52 = vshll.u32 %v789_v31, 30  ;;  %v1395_v14 = vsel %vm1383_vm9, %v1373_v56, %v1376_v5 }
 0x16f   : > { %v1393_v7 = vsel %vm1385_vm10, %v1376_v5, %v1392_v15  ;;  %v1387_v4 = vsel %vm1383_vm9, %v1367_v22, %v1370_v41  ;;  %v1396_v40 = vsel %vm1386_vm11, %v1382_v58, 1326507024  ;;  %v2737_v45 = vmul.f32 30.0, %v355_v32 }
 0x170   : > { %v1394_v60 = vsel %vm1384_vm12, %v1391_v8, %v1393_v7  ;;  %v2739_v25 = vsub.s32 %v787_v59, %v790_v52  ;;  %v813_v47 = vsub.s32 4, %v789_v31  ;;  %v1389_v17 = vsel %vm1385_vm10, %v1373_v56, %v1388_v26 }
 0x171   : > { %v1397_v53 = vsel %vm1385_vm10, %v1379_v12, %v1396_v40  ;;  %v2748_v27 = vmul.u32.u64.low %v2704_v23, %v1394_v60  ;;  %v2749_v33 = vmul.u32.u64.high %v2704_v23, %v1394_v60, %v2748_v27  ;;  %v385_v55 = vadd.f32 %v2759_v16, %v2273_v46 }
 0x172   : > { %v1398_v0 = vsel %vm1384_vm12, %v1395_v14, %v1397_v53  ;;  %v793_v20 = vsub.s32 0, %v2739_v25  ;;  %vm729_vm13 = vcmp.lt.s32.totalorder %v2563_v24, 0  ;;  %v1390_v49 = vsel %vm1384_vm12, %v1387_v4, %v1389_v17 }
 0x173   : > { %v2753_v32 = vmul.u32.u64.low %v2704_v23, %v1398_v0  ;;  %v2754_v18 = vmul.u32.u64.high %v2704_v23, %v1398_v0, %v2753_v32  ;;  %v623_v62 = vand.u32 2147483647, %v2737_v45  ;;  %v626_v13 = vand.u32 2139095040, %v2737_v45 }
 0x174   : > { %vm1134_vm14 = vcmp.lt.s32.totalorder %v2700_v42, 2  ;;  %vm2771_vm15 = vcmp.le.f32.partialorder %v727_v21, 0.7853982  ;;  %v1824_v46 = vmin.u32 %v793_v20, %v2739_v25  ;;  %v814_v59 = vsel %vm729_vm13, %v813_v47, %v789_v31 }
 0x175   : > { %v2023_v28 = vpop.eup %2022  ;;  %vm1135_vm0 = vcmp.eq.s32.totalorder %v2700_v42, 0  ;;  %v1409_v29 = vadd.s32 1, %v2749_v33  ;;  %v627_v11 = vshrl.u32 %v626_v13, 23  ;;  %vm1138_vm1 = vcmp.eq.s32.totalorder %v2700_v42, 2 }
 0x176   : > { %v2025_v19 = vpop.eup %2024  ;;  %v1139_v48 = vxor.u32 2147483648, %v2023_v28  ;;  %v795_v37 = vclz %v1824_v46  ;;  %v1406_v21 = vmul.u32 %v2704_v23, %v1390_v49  ;;  %v816_v30 = vsel %vm2771_vm15, 0, %v814_v59 }
 0x177   : > { %v1136_v2 = vxor.u32 2147483648, %v2025_v19  ;;  %vm1408_vm2 = vc.u32 %v2754_v18, %v2748_v27  ;;  %v630_v41 = vand.u32 8388607, %v623_v62  ;;  %v1819_v12 = vadd.s32 4294967169, %v627_v11 }
 0x178   : > { %v1140_v39 = vsel %vm1138_vm1, %v1139_v48, %v2025_v19  ;;  %v1825_v56 = vadd.s32 4294967294, %v795_v37  ;;  %v1410_v5 = vsel %vm1408_vm2, %v1409_v29, %v2749_v33  ;;  %vm1131_vm3 = vweird.f32 %v2275_v51 }
 0x179   : > { %v1137_v50 = vsel %vm1135_vm0, %v2023_v28, %v1136_v2  ;;  %v1411_v31 = vadd.s32 %v1410_v5, %v1406_v21  ;;  %v2791_v58 = vmul.f32 30.0, %v385_v55  ;;  %v633_v26 = vadd.s32 1, %v1819_v12 }
 0x17a   : > { %v1141_v23 = vsel %vm1134_vm14, %v1137_v50, %v1140_v39  ;;  %vm1826_vm4 = vcmp.lt.s32.totalorder %v1825_v56, 0  ;;  %v783_v8 = vadd.s32 %v2684_v44, %v2674_v9  ;;  %v820_v52 = vadd.s32 3, %v816_v30 }
 0x17b   : > { %v1142_v22 = vsel %vm1131_vm3, nan, %v1141_v23  ;;  %v798_v15 = vsel %vm1826_vm4, 0, %v1825_v56  ;;  %v1412_v7 = vadd.s32 536870912, %v1411_v31  ;;  %v631_v60 = vor.u32 8388608, %v630_v41 }
 0x17c   : > { %1669 = vst [vmem:[%s2576_s10 + $0x30] sm:$0xff] %v1142_v22  ;;  %v799_v14 = vsub.s32 32, %v798_v15  ;;  %v803_v4 = vsub.s32 4294967266, %v798_v15  ;;  %vm634_vm5 = vcmp.gt.s32.totalorder %v633_v26, 0  ;;  %v1247_v40 = vand.u32 2147483647, %v2791_v58 }
 0x17d   : > { %v2796_v51 = vshrl.u32 %v1412_v7, 30  ;;  %v635_v42 = vsel %vm634_vm5, %v633_v26, 0  ;;  %v1250_v47 = vand.u32 2139095040, %v2791_v58  ;;  %v800_v17 = vshll.u32 %v2739_v25, %v798_v15 }
 0x17e   : > { %v801_v53 = vshrl.u32 %v783_v8, %v799_v14  ;;  %v804_v0 = vadd.s32 127, %v803_v4  ;;  %v637_v33 = vand.u32 31, %v635_v42  ;;  %v2802_v55 = vand.u32 3, %v820_v52 }
 0x17f   : > { %v1414_v9 = vshll.u32 %v2796_v51, 30  ;;  %v1407_v49 = vadd.s32 %v2748_v27, %v2754_v18  ;;  %v2807_v28 = vshll.u32 %v631_v60, 8  ;;  %v2809_v59 = vshrl.u32 %v635_v42, 5 }
 0x180   : > { %v802_v44 = vor.u32 %v801_v53, %v800_v17  ;;  %v805_v20 = vshll.u32 %v804_v0, 23  ;;  %v638_v32 = vsub.s32 32, %v637_v33  ;;  %v1251_v25 = vshrl.u32 %v1250_v47, 23 }
 0x181   : > { %v2805_v13 = vsub.s32 %v1411_v31, %v1414_v9  ;;  %v2813_v19 = vand.u32 8388607, %v1247_v40  ;;  %v646_v27 = vshll.u32 %v2141_v63, %v637_v33  ;;  %v640_v30 = vshll.u32 %v2139_v57, %v637_v33 }
 0x182   : > { %v806_v46 = vor.u32 4788187, %v805_v20  ;;  %v641_v29 = vshrl.u32 %v2140_v61, %v638_v32  ;;  %v644_v11 = vshrl.u32 %v2141_v63, %v638_v32  ;;  %v809_v2 = vcvt.s32.f32 %v802_v44 }
 0x183   : > { %v1417_v48 = vsub.s32 0, %v2805_v13  ;;  %v647_v37 = vshrl.u32 %v2142_v1, %v638_v32  ;;  %v650_v21 = vshrl.u32 %v2143_v3, %v638_v32  ;;  %v643_v41 = vshll.u32 %v2140_v61, %v637_v33 }
 0x184   : > { %v807_v18 = vand.u32 2147483647, %v806_v46  ;;  %v649_v50 = vshll.u32 %v2142_v1, %v637_v33  ;;  %v1437_v5 = vsub.s32 4, %v2796_v51  ;;  %v1843_v23 = vadd.s32 4294967169, %v1251_v25 }
 0x185   : > { %v1848_v39 = vmin.u32 %v1417_v48, %v2805_v13  ;;  %v648_v12 = vor.u32 %v647_v37, %v646_v27  ;;  %vm1353_vm6 = vcmp.lt.s32.totalorder %v2599_v54, 0  ;;  %v642_v22 = vor.u32 %v641_v29, %v640_v30 }
 0x186   : > { %v810_v56 = vmul.f32 %v809_v2, %v807_v18  ;;  %v645_v26 = vor.u32 %v644_v11, %v643_v41  ;;  %v651_v8 = vor.u32 %v650_v21, %v649_v50  ;;  %v639_v52 = vshrl.u32 %v2139_v57, %v638_v32 }
 0x187   : > { %v1419_v31 = vclz %v1848_v39  ;;  %v652_v7 = vshll.u32 %v2143_v3, %v637_v33  ;;  %v653_v14 = vshrl.u32 %v2144_v10, %v638_v32  ;;  %vm655_vm7 = vcmp.lt.s32.totalorder %v2809_v59, 1 }
 0x188   : > { %v811_v15 = vxor.u32 2147483648, %v810_v56  ;;  %vm656_vm8 = vcmp.lt.s32.totalorder %v2809_v59, 2  ;;  %vm658_vm9 = vcmp.lt.s32.totalorder %v2809_v59, 4  ;;  %vm657_vm10 = vcmp.lt.s32.totalorder %v2809_v59, 3 }
 0x189   : > { %v1849_v4 = vadd.s32 4294967294, %v1419_v31  ;;  %v654_v42 = vor.u32 %v653_v14, %v652_v7  ;;  %v660_v47 = vsel %vm658_vm9, %v648_v12, 2102212464  ;;  %v663_v53 = vsel %vm655_vm7, %v642_v22, %v645_v26 }
 0x18a   : > { %v812_v60 = vsel %vm729_vm13, %v811_v15, %v810_v56  ;;  %v664_v0 = vsel %vm658_vm9, %v651_v8, 920167782  ;;  %v659_v9 = vsel %vm655_vm7, %v639_v52, %v642_v22  ;;  %v661_v35 = vsel %vm657_vm10, %v645_v26, %v660_v47 }
 0x18b   : > { %v815_v17 = vsel %vm2771_vm15, %v2563_v24, %v812_v60  ;;  %vm1850_vm11 = vcmp.lt.s32.totalorder %v1849_v4, 0  ;;  %v665_v44 = vsel %vm657_vm10, %v648_v12, %v664_v0  ;;  %v667_v48 = vsel %vm655_vm7, %v645_v26, %v648_v12 }
 0x18c   : > { %2026 = vcosq.f32 %v815_v17  ;;  %v1422_v33 = vsel %vm1850_vm11, 0, %v1849_v4  ;;  %v666_v25 = vsel %vm656_vm8, %v663_v53, %v665_v44  ;;  %v668_v29 = vsel %vm658_vm9, %v654_v42, 1326507024 }
 0x18d   : > { %2028 = vsinq.f32 %v815_v17  ;;  %v1423_v20 = vsub.s32 32, %v1422_v33  ;;  %v1427_v32 = vsub.s32 4294967266, %v1422_v33  ;;  %v1424_v46 = vshll.u32 %v2805_v13, %v1422_v33 }
 0x18e   : > { %v669_v18 = vsel %vm657_vm10, %v651_v8, %v668_v29  ;;  %v1257_v2 = vadd.s32 1, %v1843_v23  ;;  %v1438_v37 = vsel %vm1353_vm6, %v1437_v5, %v2796_v51  ;;  %vm822_vm12 = vcmp.lt.s32.totalorder %v2802_v55, 2 }
 0x18f   : > { %v1425_v11 = vshrl.u32 %v1407_v49, %v1423_v20  ;;  %v1428_v27 = vadd.s32 127, %v1427_v32  ;;  %v670_v13 = vsel %vm656_vm8, %v667_v48, %v669_v18  ;;  %vm2877_vm13 = vcmp.le.f32.partialorder %v1351_v34, 0.7853982 }
 0x190   : > { %v2866_v21 = vmul.u32.u64.low %v2807_v28, %v666_v25  ;;  %v2867_v39 = vmul.u32.u64.high %v2807_v28, %v666_v25, %v2866_v21  ;;  %v2871_v49 = vmul.u32.u64.low %v2807_v28, %v670_v13  ;;  %v2872_v50 = vmul.u32.u64.high %v2807_v28, %v670_v13, %v2871_v49 }
 0x191   : > { %v1426_v30 = vor.u32 %v1425_v11, %v1424_v46  ;;  %v1429_v41 = vshll.u32 %v1428_v27, 23  ;;  %v662_v56 = vsel %vm656_vm8, %v659_v9, %v661_v35  ;;  %vm1258_vm14 = vcmp.gt.s32.totalorder %v1257_v2, 0 }
 0x192   : > { %vm819_vm15 = vweird.f32 %v2563_v24  ;;  %vm823_vm0 = vcmp.eq.s32.totalorder %v2802_v55, 0  ;;  %v1440_v12 = vsel %vm2877_vm13, 0, %v1438_v37  ;;  %v1259_v23 = vsel %vm1258_vm14, %v1257_v2, 0 }
 0x193   : > { %v1430_v5 = vor.u32 4788187, %v1429_v41  ;;  %vm826_vm1 = vcmp.eq.s32.totalorder %v2802_v55, 2  ;;  %v681_v34 = vadd.s32 1, %v2867_v39  ;;  %v1255_v31 = vor.u32 8388608, %v2813_v19 }
 0x194   : > { %v1261_v22 = vand.u32 31, %v1259_v23  ;;  %v1433_v59 = vcvt.s32.f32 %v1426_v30  ;;  %v678_v8 = vmul.u32 %v2807_v28, %v662_v56  ;;  %vm680_vm2 = vc.u32 %v2872_v50, %v2866_v21 }
 0x195   : > { %v1431_v26 = vand.u32 2147483647, %v1430_v5  ;;  %v1444_v52 = vadd.s32 3, %v1440_v12  ;;  %v682_v7 = vsel %vm680_vm2, %v681_v34, %v2867_v39  ;;  %v2894_v14 = vshrl.u32 %v1259_v23, 5 }
 0x196   : > { %v2027_v15 = vpop.eup %2026  ;;  %v1262_v4 = vsub.s32 32, %v1261_v22  ;;  %v683_v17 = vadd.s32 %v682_v7, %v678_v8  ;;  %v1264_v19 = vshll.u32 %v2139_v57, %v1261_v22  ;;  %v1267_v28 = vshll.u32 %v2140_v61, %v1261_v22 }
 0x197   : > { %v2029_v60 = vpop.eup %2028  ;;  %v827_v42 = vxor.u32 2147483648, %v2027_v15  ;;  %v1434_v47 = vmul.f32 %v1433_v59, %v1431_v26  ;;  %v1270_v48 = vshll.u32 %v2141_v63, %v1261_v22  ;;  %v1273_v18 = vshll.u32 %v2142_v1, %v1261_v22 }
 0x198   : > { %v824_v53 = vxor.u32 2147483648, %v2029_v60  ;;  %v1265_v0 = vshrl.u32 %v2140_v61, %v1262_v4  ;;  %v1268_v33 = vshrl.u32 %v2141_v63, %v1262_v4  ;;  %v684_v20 = vadd.s32 536870912, %v683_v17 }
 0x199   : > { %v828_v9 = vsel %vm826_vm1, %v827_v42, %v2029_v60  ;;  %v1435_v44 = vxor.u32 2147483648, %v1434_v47  ;;  %v1271_v32 = vshrl.u32 %v2142_v1, %v1262_v4  ;;  %v1274_v39 = vshrl.u32 %v2143_v3, %v1262_v4 }
 0x19a   : > { %v825_v35 = vsel %vm823_vm0, %v2027_v15, %v824_v53  ;;  %v1266_v46 = vor.u32 %v1265_v0, %v1264_v19  ;;  %v1269_v25 = vor.u32 %v1268_v33, %v1267_v28  ;;  %v685_v27 = vshrl.u32 %v684_v20, 30 }
 0x19b   : > { %v829_v29 = vsel %vm822_vm12, %v825_v35, %v828_v9  ;;  %v1436_v11 = vsel %vm1353_vm6, %v1435_v44, %v1434_v47  ;;  %v1272_v13 = vor.u32 %v1271_v32, %v1270_v48  ;;  %v1276_v30 = vshll.u32 %v2143_v3, %v1261_v22 }
 0x19c   : > { %v830_v2 = vsel %vm819_vm15, nan, %v829_v29  ;;  %v1439_v37 = vsel %vm2877_vm13, %v2599_v54, %v1436_v11  ;;  %v686_v55 = vshll.u32 %v685_v27, 30  ;;  %v1277_v41 = vshrl.u32 %v2144_v10, %v1262_v4 }
 0x19d   : > { %1666 = vst [vmem:[%s2576_s10 + $0x18] sm:$0xff] %v830_v2  ;;  %2030 = vcosq.f32 %v1439_v37  ;;  %v1275_v49 = vor.u32 %v1274_v39, %v1273_v18  ;;  %v370_v24 = vadd.f32 %v2759_v16, %v2352_v38  ;;  %v1445_v56 = vand.u32 3, %v1444_v52 }
 0x19e   : > { %2032 = vsinq.f32 %v1439_v37  ;;  %v2922_v5 = vsub.s32 %v683_v17, %v686_v55  ;;  %v1278_v51 = vor.u32 %v1277_v41, %v1276_v30  ;;  %vm1279_vm3 = vcmp.lt.s32.totalorder %v2894_v14, 1 }
 0x19f   : > { %vm625_vm4 = vcmp.lt.s32.totalorder %v2737_v45, 0  ;;  %v1263_v12 = vshrl.u32 %v2139_v57, %v1262_v4  ;;  %vm1282_vm5 = vcmp.lt.s32.totalorder %v2894_v14, 4  ;;  %v1287_v23 = vsel %vm1279_vm3, %v1266_v46, %v1269_v25 }
 0x1a0   : > { %v1295_v34 = vshll.u32 %v1255_v31, 8  ;;  %v689_v22 = vsub.s32 0, %v2922_v5  ;;  %vm1281_vm6 = vcmp.lt.s32.totalorder %v2894_v14, 3  ;;  %v1284_v38 = vsel %vm1282_vm5, %v1272_v13, 2102212464 }
 0x1a1   : > { %v1288_v26 = vsel %vm1282_vm5, %v1275_v49, 920167782  ;;  %vm1280_vm7 = vcmp.lt.s32.totalorder %v2894_v14, 2  ;;  %v1292_v8 = vsel %vm1282_vm5, %v1278_v51, 1326507024  ;;  %v2933_v15 = vmul.f32 30.0, %v370_v24 }
 0x1a2   : > { %v1289_v59 = vsel %vm1281_vm6, %v1272_v13, %v1288_v26  ;;  %v1820_v52 = vmin.u32 %v689_v22, %v2922_v5  ;;  %v1283_v7 = vsel %vm1279_vm3, %v1263_v12, %v1266_v46  ;;  %v1291_v4 = vsel %vm1279_vm3, %v1269_v25, %v1272_v13 }
 0x1a3   : > { %v1290_v31 = vsel %vm1280_vm7, %v1287_v23, %v1289_v59  ;;  %vm1443_vm8 = vweird.f32 %v2599_v54  ;;  %v1285_v60 = vsel %vm1281_vm6, %v1269_v25, %v1284_v38  ;;  %v1293_v42 = vsel %vm1281_vm6, %v1275_v49, %v1292_v8 }
 0x1a4   : > { %v2943_v47 = vmul.u32.u64.low %v1295_v34, %v1290_v31  ;;  %v2944_v17 = vmul.u32.u64.high %v1295_v34, %v1290_v31, %v2943_v47  ;;  %vm1446_vm9 = vcmp.lt.s32.totalorder %v1445_v56, 2  ;;  %v691_v19 = vclz %v1820_v52 }
 0x1a5   : > { %v709_v53 = vsub.s32 4, %v685_v27  ;;  %v400_v0 = vadd.f32 %v2759_v16, %v2448_v36  ;;  %vm1447_vm10 = vcmp.eq.s32.totalorder %v1445_v56, 0  ;;  %v1294_v28 = vsel %vm1280_vm7, %v1291_v4, %v1293_v42 }
 0x1a6   : > { %v935_v33 = vand.u32 2147483647, %v2933_v15  ;;  %v938_v9 = vand.u32 2139095040, %v2933_v15  ;;  %v1821_v20 = vadd.s32 4294967294, %v691_v19  ;;  %v1286_v32 = vsel %vm1280_vm7, %v1283_v7, %v1285_v60 }
 0x1a7   : > { %v2031_v44 = vpop.eup %2030  ;;  %v2955_v35 = vmul.u32.u64.low %v1295_v34, %v1294_v28  ;;  %v2956_v46 = vmul.u32.u64.high %v1295_v34, %v1294_v28, %v2955_v35  ;;  %vm1450_vm11 = vcmp.eq.s32.totalorder %v1445_v56, 2  ;;  %v679_v36 = vadd.s32 %v2866_v21, %v2872_v50 }
 0x1a8   : > { %v2033_v25 = vpop.eup %2032  ;;  %v1451_v48 = vxor.u32 2147483648, %v2031_v44  ;;  %v939_v29 = vshrl.u32 %v938_v9, 23  ;;  %vm1822_vm12 = vcmp.lt.s32.totalorder %v1821_v20, 0  ;;  %v710_v18 = vsel %vm625_vm4, %v709_v53, %v685_v27 }
 0x1a9   : > { %v1448_v11 = vxor.u32 2147483648, %v2033_v25  ;;  %v1305_v2 = vadd.s32 1, %v2944_v17  ;;  %v694_v14 = vsel %vm1822_vm12, 0, %v1821_v20  ;;  %v1302_v13 = vmul.u32 %v1295_v34, %v1286_v32 }
 0x1aa   : > { %v1452_v37 = vsel %vm1450_vm11, %v1451_v48, %v2033_v25  ;;  %v1831_v39 = vadd.s32 4294967169, %v939_v29  ;;  %v695_v30 = vsub.s32 32, %v694_v14  ;;  %v699_v41 = vsub.s32 4294967266, %v694_v14 }
 0x1ab   : > { %v1449_v55 = vsel %vm1447_vm10, %v2031_v44, %v1448_v11  ;;  %v942_v21 = vand.u32 8388607, %v935_v33  ;;  %v696_v49 = vshll.u32 %v2922_v5, %v694_v14  ;;  %vm1304_vm13 = vc.u32 %v2956_v46, %v2943_v47 }
 0x1ac   : > { %v1453_v50 = vsel %vm1446_vm9, %v1449_v55, %v1452_v37  ;;  %v945_v27 = vadd.s32 1, %v1831_v39  ;;  %v697_v51 = vshrl.u32 %v679_v36, %v695_v30  ;;  %v700_v12 = vadd.s32 127, %v699_v41 }
 0x1ad   : > { %v1454_v24 = vsel %vm1443_vm8, nan, %v1453_v50  ;;  %v1306_v23 = vsel %vm1304_vm13, %v1305_v2, %v2944_v17  ;;  %vm2976_vm14 = vcmp.le.f32.partialorder %v623_v62, 0.7853982  ;;  %v943_v38 = vor.u32 8388608, %v942_v21 }
 0x1ae   : > { %1672 = vst [vmem:[%s2576_s10 + $0x48] sm:$0xff] %v1454_v24  ;;  %v1307_v56 = vadd.s32 %v1306_v23, %v1302_v13  ;;  %vm946_vm15 = vcmp.gt.s32.totalorder %v945_v27, 0  ;;  %v698_v5 = vor.u32 %v697_v51, %v696_v49  ;;  %v701_v22 = vshll.u32 %v700_v12, 23 }
 0x1af   : > { %v947_v26 = vsel %vm946_vm15, %v945_v27, 0  ;;  %v712_v54 = vsel %vm2976_vm14, 0, %v710_v18  ;;  %v2982_v52 = vmul.f32 30.0, %v400_v0  ;;  %v2988_v4 = vadd.f32 %v2759_v16, %v2558_v43 }
 0x1b0   : > { %v1308_v59 = vadd.s32 536870912, %v1307_v56  ;;  %v949_v8 = vand.u32 31, %v947_v26  ;;  %v702_v7 = vor.u32 4788187, %v701_v22  ;;  %v705_v42 = vcvt.s32.f32 %v698_v5 }
 0x1b1   : > { %v2990_v17 = vadd.s32 3, %v712_v54  ;;  %v2992_v19 = vshll.u32 %v943_v38, 8  ;;  %v1562_v9 = vand.u32 2139095040, %v2982_v52  ;;  %v948_v11 = vshrl.u32 %v947_v26, 5 }
 0x1b2   : > { %v2984_v31 = vshrl.u32 %v1308_v59, 30  ;;  %v950_v62 = vsub.s32 32, %v949_v8  ;;  %v703_v60 = vand.u32 2147483647, %v702_v7  ;;  %v952_v28 = vshll.u32 %v2139_v57, %v949_v8 }
 0x1b3   : > { %v955_v25 = vshll.u32 %v2140_v61, %v949_v8  ;;  %v958_v48 = vshll.u32 %v2141_v63, %v949_v8  ;;  %v961_v18 = vshll.u32 %v2142_v1, %v949_v8  ;;  %v964_v2 = vshll.u32 %v2143_v3, %v949_v8 }
 0x1b4   : > { %v1310_v53 = vshll.u32 %v2984_v31, 30  ;;  %v953_v0 = vshrl.u32 %v2140_v61, %v950_v62  ;;  %v706_v44 = vmul.f32 %v705_v42, %v703_v60  ;;  %v956_v20 = vshrl.u32 %v2141_v63, %v950_v62 }
 0x1b5   : > { %v959_v43 = vshrl.u32 %v2142_v1, %v950_v62  ;;  %v962_v32 = vshrl.u32 %v2143_v3, %v950_v62  ;;  %v965_v36 = vshrl.u32 %v2144_v10, %v950_v62  ;;  %vm1249_vm0 = vcmp.lt.s32.totalorder %v2791_v58, 0 }
 0x1b6   : > { %v3001_v35 = vsub.s32 %v1307_v56, %v1310_v53  ;;  %v707_v29 = vxor.u32 2147483648, %v706_v44  ;;  %v954_v14 = vor.u32 %v953_v0, %v952_v28  ;;  %v957_v13 = vor.u32 %v956_v20, %v955_v25 }
 0x1b7   : > { %v960_v39 = vor.u32 %v959_v43, %v958_v48  ;;  %v1303_v30 = vadd.s32 %v2943_v47, %v2956_v46  ;;  %v963_v41 = vor.u32 %v962_v32, %v961_v18  ;;  %v1563_v21 = vshrl.u32 %v1562_v9, 23 }
 0x1b8   : > { %v1313_v37 = vsub.s32 0, %v3001_v35  ;;  %v708_v55 = vsel %vm625_vm4, %v707_v29, %v706_v44  ;;  %v1333_v27 = vsub.s32 4, %v2984_v31  ;;  %v966_v24 = vor.u32 %v965_v36, %v964_v2 }
 0x1b9   : > { %v711_v50 = vsel %vm2976_vm14, %v2737_v45, %v708_v55  ;;  %v951_v51 = vshrl.u32 %v2139_v57, %v950_v62  ;;  %vm967_vm1 = vcmp.lt.s32.totalorder %v948_v11, 1  ;;  %vm970_vm2 = vcmp.lt.s32.totalorder %v948_v11, 4 }
 0x1ba   : > { %v1844_v49 = vmin.u32 %v1313_v37, %v3001_v35  ;;  %2034 = vcosq.f32 %v711_v50  ;;  %vm3022_vm3 = vcmp.le.f32.partialorder %v1247_v40, 0.7853982  ;;  %v972_v12 = vsel %vm970_vm2, %v960_v39, 2102212464 }
 0x1bb   : > { %2036 = vsinq.f32 %v711_v50  ;;  %v975_v23 = vsel %vm967_vm1, %v954_v14, %v957_v13  ;;  %vm968_vm4 = vcmp.lt.s32.totalorder %v948_v11, 2  ;;  %vm969_vm5 = vcmp.lt.s32.totalorder %v948_v11, 3 }
 0x1bc   : > { %v1315_v46 = vclz %v1844_v49  ;;  %v976_v34 = vsel %vm970_vm2, %v963_v41, 920167782  ;;  %v979_v56 = vsel %vm967_vm1, %v957_v13, %v960_v39  ;;  %v971_v22 = vsel %vm967_vm1, %v951_v51, %v954_v14 }
 0x1bd   : > { %v977_v38 = vsel %vm969_vm5, %v960_v39, %v976_v34  ;;  %v980_v26 = vsel %vm970_vm2, %v966_v24, 1326507024  ;;  %v973_v54 = vsel %vm969_vm5, %v957_v13, %v972_v12  ;;  %v1855_v7 = vadd.s32 4294967169, %v1563_v21 }
 0x1be   : > { %v1845_v5 = vadd.s32 4294967294, %v1315_v46  ;;  %v978_v59 = vsel %vm968_vm4, %v975_v23, %v977_v38  ;;  %v981_v8 = vsel %vm969_vm5, %v963_v41, %v980_v26  ;;  %vm715_vm7 = vweird.f32 %v2737_v45 }
 0x1bf   : > { %v982_v40 = vsel %vm968_vm4, %v979_v56, %v981_v8  ;;  %v3029_v62 = vmul.u32.u64.low %v2992_v19, %v978_v59  ;;  %v3030_v60 = vmul.u32.u64.high %v2992_v19, %v978_v59, %v3029_v62  ;;  %v1569_v0 = vadd.s32 1, %v1855_v7 }
 0x1c0   : > { %vm1846_vm6 = vcmp.lt.s32.totalorder %v1845_v5, 0  ;;  %v3034_v53 = vmul.u32.u64.low %v2992_v19, %v982_v40  ;;  %v3035_v28 = vmul.u32.u64.high %v2992_v19, %v982_v40, %v3034_v53  ;;  %v1334_v20 = vsel %vm1249_vm0, %v1333_v27, %v2984_v31 }
 0x1c1   : > { %v1318_v42 = vsel %vm1846_vm6, 0, %v1845_v5  ;;  %v974_v43 = vsel %vm968_vm4, %v971_v22, %v973_v54  ;;  %v717_v32 = vand.u32 3, %v2990_v17  ;;  %v1559_v48 = vand.u32 2147483647, %v2982_v52 }
 0x1c2   : > { %v1319_v9 = vsub.s32 32, %v1318_v42  ;;  %v1323_v44 = vsub.s32 4294967266, %v1318_v42  ;;  %v1320_v25 = vshll.u32 %v3001_v35, %v1318_v42  ;;  %vm1570_vm8 = vcmp.gt.s32.totalorder %v1569_v0, 0 }
 0x1c3   : > { %v993_v18 = vadd.s32 1, %v3030_v60  ;;  %v1571_v2 = vsel %vm1570_vm8, %v1569_v0, 0  ;;  %v1336_v14 = vsel %vm3022_vm3, 0, %v1334_v20  ;;  %v990_v31 = vmul.u32 %v2992_v19, %v974_v43 }
 0x1c4   : > { %v1321_v36 = vshrl.u32 %v1303_v30, %v1319_v9  ;;  %v1324_v29 = vadd.s32 127, %v1323_v44  ;;  %v2035_v37 = vpop.eup %2034  ;;  %vm992_vm9 = vc.u32 %v3035_v28, %v3029_v62  ;;  %v1573_v17 = vand.u32 31, %v1571_v2 }
 0x1c5   : > { %v2037_v11 = vpop.eup %2036  ;;  %v723_v35 = vxor.u32 2147483648, %v2035_v37  ;;  %v994_v55 = vsel %vm992_vm9, %v993_v18, %v3030_v60  ;;  %vm722_vm10 = vcmp.eq.s32.totalorder %v717_v32, 2  ;;  %vm718_vm11 = vcmp.lt.s32.totalorder %v717_v32, 2 }
 0x1c6   : > { %v1322_v13 = vor.u32 %v1321_v36, %v1320_v25  ;;  %v1325_v39 = vshll.u32 %v1324_v29, 23  ;;  %v720_v30 = vxor.u32 2147483648, %v2037_v11  ;;  %v995_v41 = vadd.s32 %v994_v55, %v990_v31 }
 0x1c7   : > { %v1574_v21 = vsub.s32 32, %v1573_v17  ;;  %vm719_vm12 = vcmp.eq.s32.totalorder %v717_v32, 0  ;;  %v724_v50 = vsel %vm722_vm10, %v723_v35, %v2037_v11  ;;  %v1340_v27 = vadd.s32 3, %v1336_v14 }
 0x1c8   : > { %v1326_v49 = vor.u32 4788187, %v1325_v39  ;;  %v721_v19 = vsel %vm719_vm12, %v2035_v37, %v720_v30  ;;  %v996_v24 = vadd.s32 536870912, %v995_v41  ;;  %v1566_v51 = vand.u32 8388607, %v1559_v48 }
 0x1c9   : > { %v725_v46 = vsel %vm718_vm11, %v721_v19, %v724_v50  ;;  %v1329_v23 = vcvt.s32.f32 %v1322_v13  ;;  %v1577_v34 = vshrl.u32 %v2140_v61, %v1574_v21  ;;  %v1580_v22 = vshrl.u32 %v2141_v63, %v1574_v21 }
 0x1ca   : > { %v1327_v12 = vand.u32 2147483647, %v1326_v49  ;;  %v726_v56 = vsel %vm715_vm7, nan, %v725_v46  ;;  %v997_v5 = vshrl.u32 %v996_v24, 30  ;;  %v1583_v38 = vshrl.u32 %v2142_v1, %v1574_v21 }
 0x1cb   : > { %1665 = vst [vmem:[%s2576_s10 + $0x10] sm:$0xff] %v726_v56  ;;  %v1572_v54 = vshrl.u32 %v1571_v2, 5  ;;  %v1585_v59 = vshll.u32 %v2142_v1, %v1573_v17  ;;  %v1586_v8 = vshrl.u32 %v2143_v3, %v1574_v21  ;;  %v1576_v40 = vshll.u32 %v2139_v57, %v1573_v17 }
 0x1cc   : > { %v1330_v26 = vmul.f32 %v1329_v23, %v1327_v12  ;;  %v998_v7 = vshll.u32 %v997_v5, 30  ;;  %v1579_v60 = vshll.u32 %v2140_v61, %v1573_v17  ;;  %v1582_v45 = vshll.u32 %v2141_v63, %v1573_v17 }
 0x1cd   : > { %v1587_v53 = vor.u32 %v1586_v8, %v1585_v59  ;;  %v1588_v0 = vshll.u32 %v2143_v3, %v1573_v17  ;;  %v1589_v9 = vshrl.u32 %v2144_v10, %v1574_v21  ;;  %vm937_vm13 = vcmp.lt.s32.totalorder %v2933_v15, 0 }
 0x1ce   : > { %v1331_v42 = vxor.u32 2147483648, %v1330_v26  ;;  %v3068_v44 = vsub.s32 %v995_v41, %v998_v7  ;;  %v1578_v20 = vor.u32 %v1577_v34, %v1576_v40  ;;  %v1581_v43 = vor.u32 %v1580_v22, %v1579_v60 }
 0x1cf   : > { %v1584_v32 = vor.u32 %v1583_v38, %v1582_v45  ;;  %v3072_v36 = vand.u32 3, %v1340_v27  ;;  %v1567_v29 = vor.u32 8388608, %v1566_v51  ;;  %v1590_v18 = vor.u32 %v1589_v9, %v1588_v0 }
 0x1d0   : > { %v1332_v25 = vsel %vm1249_vm0, %v1331_v42, %v1330_v26  ;;  %v1001_v37 = vsub.s32 0, %v3068_v44  ;;  %v1575_v14 = vshrl.u32 %v2139_v57, %v1574_v21  ;;  %vm1594_vm14 = vcmp.lt.s32.totalorder %v1572_v54, 4 }
 0x1d1   : > { %v1335_v2 = vsel %vm3022_vm3, %v2791_v58, %v1332_v25  ;;  %vm1591_vm15 = vcmp.lt.s32.totalorder %v1572_v54, 1  ;;  %vm1593_vm1 = vcmp.lt.s32.totalorder %v1572_v54, 3  ;;  %v1600_v31 = vsel %vm1594_vm14, %v1587_v53, 920167782 }
 0x1d2   : > { %2038 = vcosq.f32 %v1335_v2  ;;  %v1832_v17 = vmin.u32 %v1001_v37, %v3068_v44  ;;  %v1596_v11 = vsel %vm1594_vm14, %v1584_v32, 2102212464  ;;  %v1599_v35 = vsel %vm1591_vm15, %v1578_v20, %v1581_v43 }
 0x1d3   : > { %2040 = vsinq.f32 %v1335_v2  ;;  %v1021_v13 = vsub.s32 4, %v997_v5  ;;  %v1601_v39 = vsel %vm1593_vm1, %v1584_v32, %v1600_v31  ;;  %v1603_v55 = vsel %vm1591_vm15, %v1581_v43, %v1584_v32 }
 0x1d4   : > { %v1604_v47 = vsel %vm1594_vm14, %v1590_v18, 1326507024  ;;  %v1003_v30 = vclz %v1832_v17  ;;  %vm1592_vm0 = vcmp.lt.s32.totalorder %v1572_v54, 2  ;;  %v1607_v41 = vshll.u32 %v1567_v29, 8 }
 0x1d5   : > { %v3082_v21 = vmul.f32 30.0, %v2988_v4  ;;  %v1595_v50 = vsel %vm1591_vm15, %v1575_v14, %v1578_v20  ;;  %v1597_v49 = vsel %vm1593_vm1, %v1581_v43, %v1596_v11  ;;  %v1602_v19 = vsel %vm1592_vm0, %v1599_v35, %v1601_v39 }
 0x1d6   : > { %v1605_v27 = vsel %vm1593_vm1, %v1587_v53, %v1604_v47  ;;  %v1833_v24 = vadd.s32 4294967294, %v1003_v30  ;;  %v3086_v46 = vmul.u32.u64.low %v1607_v41, %v1602_v19  ;;  %v3087_v12 = vmul.u32.u64.high %v1607_v41, %v1602_v19, %v3086_v46 }
 0x1d7   : > { %v1606_v51 = vsel %vm1592_vm0, %v1603_v55, %v1605_v27  ;;  %v1022_v23 = vsel %vm937_vm13, %v1021_v13, %v997_v5  ;;  %vm3096_vm2 = vcmp.le.f32.partialorder %v935_v33, 0.7853982  ;;  %v1598_v22 = vsel %vm1592_vm0, %v1595_v50, %v1597_v49 }
 0x1d8   : > { %v3091_v34 = vmul.u32.u64.low %v1607_v41, %v1606_v51  ;;  %v3092_v56 = vmul.u32.u64.high %v1607_v41, %v1606_v51, %v3091_v34  ;;  %vm1834_vm3 = vcmp.lt.s32.totalorder %v1833_v24, 0  ;;  %v834_v38 = vand.u32 2139095040, %v3082_v21 }
 0x1d9   : > { %vm1343_vm4 = vcmp.eq.s32.totalorder %v3072_v36, 0  ;;  %vm1346_vm5 = vcmp.eq.s32.totalorder %v3072_v36, 2  ;;  %v991_v5 = vadd.s32 %v3029_v62, %v3035_v28  ;;  %v1006_v26 = vsel %vm1834_vm3, 0, %v1833_v24 }
 0x1da   : > { %v1007_v54 = vsub.s32 32, %v1006_v26  ;;  %v1011_v59 = vsub.s32 4294967266, %v1006_v26  ;;  %v1024_v33 = vsel %vm3096_vm2, 0, %v1022_v23  ;;  %v1617_v8 = vadd.s32 1, %v3087_v12 }
 0x1db   : > { %v1008_v40 = vshll.u32 %v3068_v44, %v1006_v26  ;;  %v1614_v60 = vmul.u32 %v1607_v41, %v1598_v22  ;;  %vm1616_vm6 = vc.u32 %v3092_v56, %v3086_v46  ;;  %v835_v45 = vshrl.u32 %v834_v38, 23 }
 0x1dc   : > { %v2039_v7 = vpop.eup %2038  ;;  %v1009_v0 = vshrl.u32 %v991_v5, %v1007_v54  ;;  %v1012_v9 = vadd.s32 127, %v1011_v59  ;;  %v1618_v62 = vsel %vm1616_vm6, %v1617_v8, %v3087_v12  ;;  %v831_v43 = vand.u32 2147483647, %v3082_v21 }
 0x1dd   : > { %v2041_v42 = vpop.eup %2040  ;;  %v1347_v53 = vxor.u32 2147483648, %v2039_v7  ;;  %v1619_v20 = vadd.s32 %v1618_v62, %v1614_v60  ;;  %v1827_v32 = vadd.s32 4294967169, %v835_v45  ;;  %v395_v18 = vadd.f32 %v2759_v16, %v2670_v6 }
 0x1de   : > { %v1344_v28 = vxor.u32 2147483648, %v2041_v42  ;;  %v1010_v44 = vor.u32 %v1009_v0, %v1008_v40  ;;  %v1013_v29 = vshll.u32 %v1012_v9, 23  ;;  %vm1342_vm7 = vcmp.lt.s32.totalorder %v3072_v36, 2 }
 0x1df   : > { %v1348_v25 = vsel %vm1346_vm5, %v1347_v53, %v2041_v42  ;;  %v1620_v37 = vadd.s32 536870912, %v1619_v20  ;;  %v841_v14 = vadd.s32 1, %v1827_v32  ;;  %vm1339_vm8 = vweird.f32 %v2791_v58 }
 0x1e0   : > { %v1345_v2 = vsel %vm1343_vm4, %v2039_v7, %v1344_v28  ;;  %v1014_v17 = vor.u32 4788187, %v1013_v29  ;;  %v1028_v11 = vadd.s32 3, %v1024_v33  ;;  %v838_v39 = vand.u32 8388607, %v831_v43 }
 0x1e1   : > { %v1349_v31 = vsel %vm1342_vm7, %v1345_v2, %v1348_v25  ;;  %v3120_v13 = vshrl.u32 %v1620_v37, 30  ;;  %vm842_vm9 = vcmp.gt.s32.totalorder %v841_v14, 0  ;;  %v1017_v16 = vcvt.s32.f32 %v1010_v44 }
 0x1e2   : > { %v1350_v35 = vsel %vm1339_vm8, nan, %v1349_v31  ;;  %v1015_v6 = vand.u32 2147483647, %v1014_v17  ;;  %v843_v55 = vsel %vm842_vm9, %v841_v14, 0  ;;  %v3125_v36 = vmul.f32 30.0, %v395_v18 }
 0x1e3   : > { %1671 = vst [vmem:[%s2576_s10 + $0x40] sm:$0xff] %v1350_v35  ;;  %v1622_v47 = vshll.u32 %v3120_v13, 30  ;;  %v845_v30 = vand.u32 31, %v843_v55  ;;  %v3128_v41 = vand.u32 3, %v1028_v11  ;;  %v1615_v27 = vadd.s32 %v3086_v46, %v3092_v56 }
 0x1e4   : > { %v1018_v58 = vmul.f32 %v1017_v16, %v1015_v6  ;;  %v839_v24 = vor.u32 8388608, %v838_v39  ;;  %v1458_v51 = vand.u32 2139095040, %v3125_v36  ;;  %v844_v23 = vshrl.u32 %v843_v55, 5 }
 0x1e5   : > { %v3130_v50 = vsub.s32 %v1619_v20, %v1622_v47  ;;  %v846_v49 = vsub.s32 32, %v845_v30  ;;  %v848_v34 = vshll.u32 %v2139_v57, %v845_v30  ;;  %v851_v5 = vshll.u32 %v2140_v61, %v845_v30 }
 0x1e6   : > { %v1019_v19 = vxor.u32 2147483648, %v1018_v58  ;;  %v854_v59 = vshll.u32 %v2141_v63, %v845_v30  ;;  %v857_v33 = vshll.u32 %v2142_v1, %v845_v30  ;;  %v3149_v42 = vshll.u32 %v839_v24, 8 }
 0x1e7   : > { %v1625_v12 = vsub.s32 0, %v3130_v50  ;;  %v849_v22 = vshrl.u32 %v2140_v61, %v846_v49  ;;  %v852_v26 = vshrl.u32 %v2141_v63, %v846_v49  ;;  %v855_v54 = vshrl.u32 %v2142_v1, %v846_v49 }
 0x1e8   : > { %v1020_v38 = vsel %vm937_vm13, %v1019_v19, %v1018_v58  ;;  %v858_v40 = vshrl.u32 %v2143_v3, %v846_v49  ;;  %v847_v53 = vshrl.u32 %v2139_v57, %v846_v49  ;;  %v860_v0 = vshll.u32 %v2143_v3, %v845_v30 }
 0x1e9   : > { %v1023_v46 = vsel %vm3096_vm2, %v2933_v15, %v1020_v38  ;;  %v1856_v56 = vmin.u32 %v1625_v12, %v3130_v50  ;;  %v850_v8 = vor.u32 %v849_v22, %v848_v34  ;;  %v853_v7 = vor.u32 %v852_v26, %v851_v5 }
 0x1ea   : > { %2042 = vcosq.f32 %v1023_v46  ;;  %v856_v45 = vor.u32 %v855_v54, %v854_v59  ;;  %v859_v4 = vor.u32 %v858_v40, %v857_v33  ;;  %v861_v9 = vshrl.u32 %v2144_v10, %v846_v49 }
 0x1eb   : > { %2044 = vsinq.f32 %v1023_v46  ;;  %v1627_v60 = vclz %v1856_v56  ;;  %vm863_vm10 = vcmp.lt.s32.totalorder %v844_v23, 1  ;;  %vm865_vm11 = vcmp.lt.s32.totalorder %v844_v23, 3 }
 0x1ec   : > { %v1459_v28 = vshrl.u32 %v1458_v51, 23  ;;  %v862_v20 = vor.u32 %v861_v9, %v860_v0  ;;  %vm866_vm12 = vcmp.lt.s32.totalorder %v844_v23, 4  ;;  %v867_v32 = vsel %vm863_vm10, %v847_v53, %v850_v8 }
 0x1ed   : > { %v1857_v62 = vadd.s32 4294967294, %v1627_v60  ;;  %v871_v25 = vsel %vm863_vm10, %v850_v8, %v853_v7  ;;  %v868_v44 = vsel %vm866_vm12, %v856_v45, 2102212464  ;;  %v872_v29 = vsel %vm866_vm12, %v859_v4, 920167782 }
 0x1ee   : > { %v875_v18 = vsel %vm863_vm10, %v853_v7, %v856_v45  ;;  %vm1030_vm14 = vcmp.lt.s32.totalorder %v3128_v41, 2  ;;  %v869_v37 = vsel %vm865_vm11, %v853_v7, %v868_v44  ;;  %v873_v14 = vsel %vm865_vm11, %v856_v45, %v872_v29 }
 0x1ef   : > { %vm1858_vm13 = vcmp.lt.s32.totalorder %v1857_v62, 0  ;;  %v876_v31 = vsel %vm866_vm12, %v862_v20, 1326507024  ;;  %vm1027_vm15 = vweird.f32 %v2933_v15  ;;  %vm864_vm1 = vcmp.lt.s32.totalorder %v844_v23, 2 }
 0x1f0   : > { %v1630_v2 = vsel %vm1858_vm13, 0, %v1857_v62  ;;  %v1455_v35 = vand.u32 2147483647, %v3125_v36  ;;  %v874_v6 = vsel %vm864_vm1, %v871_v25, %v873_v14  ;;  %v877_v16 = vsel %vm865_vm11, %v859_v4, %v876_v31 }
 0x1f1   : > { %v1631_v17 = vsub.s32 32, %v1630_v2  ;;  %v1635_v11 = vsub.s32 4294967266, %v1630_v2  ;;  %v1632_v39 = vshll.u32 %v3130_v50, %v1630_v2  ;;  %v1851_v55 = vadd.s32 4294967169, %v1459_v28 }
 0x1f2   : > { %v870_v58 = vsel %vm864_vm1, %v867_v32, %v869_v37  ;;  %v878_v49 = vsel %vm864_vm1, %v875_v18, %v877_v16  ;;  %v3166_v12 = vmul.u32.u64.low %v3149_v42, %v874_v6  ;;  %v3167_v34 = vmul.u32.u64.high %v3149_v42, %v874_v6, %v3166_v12 }
 0x1f3   : > { %v1633_v47 = vshrl.u32 %v1615_v27, %v1631_v17  ;;  %v1636_v30 = vadd.s32 127, %v1635_v11  ;;  %v3162_v24 = vmul.u32.u64.low %v3149_v42, %v878_v49  ;;  %v3163_v51 = vmul.u32.u64.high %v3149_v42, %v878_v49, %v3162_v24 }
 0x1f4   : > { %v2043_v19 = vpop.eup %2042  ;;  %v1465_v5 = vadd.s32 1, %v1851_v55  ;;  %vm1031_vm0 = vcmp.eq.s32.totalorder %v3128_v41, 0  ;;  %vm1034_vm2 = vcmp.eq.s32.totalorder %v3128_v41, 2  ;;  %v1462_v26 = vand.u32 8388607, %v1455_v35 }
 0x1f5   : > { %v2045_v22 = vpop.eup %2044  ;;  %v1035_v50 = vxor.u32 2147483648, %v2043_v19  ;;  %v1634_v38 = vor.u32 %v1633_v47, %v1632_v39  ;;  %v1637_v23 = vshll.u32 %v1636_v30, 23  ;;  %v1645_v56 = vsub.s32 4, %v3120_v13 }
 0x1f6   : > { %v1032_v27 = vxor.u32 2147483648, %v2045_v22  ;;  %vm1466_vm3 = vcmp.gt.s32.totalorder %v1465_v5, 0  ;;  %v886_v33 = vmul.u32 %v3149_v42, %v870_v58  ;;  %vm888_vm4 = vc.u32 %v3163_v51, %v3166_v12 }
 0x1f7   : > { %v1036_v54 = vsel %vm1034_vm2, %v1035_v50, %v2045_v22  ;;  %v1638_v46 = vor.u32 4788187, %v1637_v23  ;;  %v889_v8 = vadd.s32 1, %v3167_v34  ;;  %v1641_v60 = vcvt.s32.f32 %v1634_v38 }
 0x1f8   : > { %v1033_v59 = vsel %vm1031_vm0, %v2043_v19, %v1032_v27  ;;  %v1467_v45 = vsel %vm1466_vm3, %v1465_v5, 0  ;;  %vm1561_vm5 = vcmp.lt.s32.totalorder %v2982_v52, 0  ;;  %vm3188_vm6 = vcmp.le.f32.partialorder %v1559_v48, 0.7853982 }
 0x1f9   : > { %v1037_v7 = vsel %vm1030_vm14, %v1033_v59, %v1036_v54  ;;  %v1639_v40 = vand.u32 2147483647, %v1638_v46  ;;  %v890_v4 = vsel %vm888_vm4, %v889_v8, %v3167_v34  ;;  %v1469_v0 = vand.u32 31, %v1467_v45 }
 0x1fa   : > { %v1038_v53 = vsel %vm1027_vm15, nan, %v1037_v7  ;;  %v891_v9 = vadd.s32 %v890_v4, %v886_v33  ;;  %v1463_v62 = vor.u32 8388608, %v1462_v26  ;;  %v1646_v15 = vsel %vm1561_vm5, %v1645_v56, %v3120_v13 }
 0x1fb   : > { %1668 = vst [vmem:[%s2576_s10 + $0x28] sm:$0xff] %v1038_v53  ;;  %v1642_v41 = vmul.f32 %v1641_v60, %v1639_v40  ;;  %v1468_v28 = vshrl.u32 %v1467_v45, 5  ;;  %v1470_v20 = vsub.s32 32, %v1469_v0  ;;  %v1472_v32 = vshll.u32 %v2139_v57, %v1469_v0 }
 0x1fc   : > { %v892_v44 = vadd.s32 536870912, %v891_v9  ;;  %v1475_v29 = vshll.u32 %v2140_v61, %v1469_v0  ;;  %v1478_v48 = vshll.u32 %v2141_v63, %v1469_v0  ;;  %v1481_v14 = vshll.u32 %v2142_v1, %v1469_v0 }
 0x1fd   : > { %v1643_v25 = vxor.u32 2147483648, %v1642_v41  ;;  %v1473_v18 = vshrl.u32 %v2140_v61, %v1470_v20  ;;  %v1476_v2 = vshrl.u32 %v2141_v63, %v1470_v20  ;;  %v1479_v37 = vshrl.u32 %v2142_v1, %v1470_v20 }
 0x1fe   : > { %v3204_v31 = vshrl.u32 %v892_v44, 30  ;;  %v1482_v17 = vshrl.u32 %v2143_v3, %v1470_v20  ;;  %v1485_v11 = vshrl.u32 %v2144_v10, %v1470_v20  ;;  %v1484_v63 = vshll.u32 %v2143_v3, %v1469_v0 }
 0x1ff   : > { %v1644_v13 = vsel %vm1561_vm5, %v1643_v25, %v1642_v41  ;;  %v1474_v61 = vor.u32 %v1473_v18, %v1472_v32  ;;  %v1477_v6 = vor.u32 %v1476_v2, %v1475_v29  ;;  %v1648_v1 = vsel %vm3188_vm6, 0, %v1646_v15 }
 0x200   : > { %v1647_v39 = vsel %vm3188_vm6, %v2982_v52, %v1644_v13  ;;  %v894_v16 = vshll.u32 %v3204_v31, 30  ;;  %v1483_v55 = vor.u32 %v1482_v17, %v1481_v14  ;;  %v1480_v47 = vor.u32 %v1479_v37, %v1478_v48 }
 0x201   : > { %2046 = vcosq.f32 %v1647_v39  ;;  %v1486_v30 = vor.u32 %v1485_v11, %v1484_v63  ;;  %vm1487_vm7 = vcmp.lt.s32.totalorder %v1468_v28, 1  ;;  %v1652_v10 = vadd.s32 3, %v1648_v1 }
 0x202   : > { %2048 = vsinq.f32 %v1647_v39  ;;  %v895_v58 = vsub.s32 %v891_v9, %v894_v16  ;;  %vm1490_vm8 = vcmp.lt.s32.totalorder %v1468_v28, 4  ;;  %v1495_v49 = vsel %vm1487_vm7, %v1474_v61, %v1477_v6 }
 0x203   : > { %v1503_v19 = vshll.u32 %v1463_v62, 8  ;;  %vm1488_vm9 = vcmp.lt.s32.totalorder %v1468_v28, 2  ;;  %vm1489_vm10 = vcmp.lt.s32.totalorder %v1468_v28, 3  ;;  %v1496_v3 = vsel %vm1490_vm8, %v1483_v55, 920167782 }
 0x204   : > { %v897_v24 = vsub.s32 0, %v895_v58  ;;  %v1492_v34 = vsel %vm1490_vm8, %v1480_v47, 2102212464  ;;  %v1497_v22 = vsel %vm1489_vm10, %v1480_v47, %v1496_v3  ;;  %v1499_v50 = vsel %vm1487_vm7, %v1477_v6, %v1480_v47 }
 0x205   : > { %v1500_v38 = vsel %vm1490_vm8, %v1486_v30, 1326507024  ;;  %v1471_v5 = vshrl.u32 %v2139_v57, %v1470_v20  ;;  %v1498_v27 = vsel %vm1488_vm9, %v1495_v49, %v1497_v22  ;;  %v1653_v54 = vand.u32 3, %v1652_v10 }
 0x206   : > { %v1828_v23 = vmin.u32 %v897_v24, %v895_v58  ;;  %v1501_v26 = vsel %vm1489_vm10, %v1483_v55, %v1500_v38  ;;  %v3220_v56 = vmul.u32.u64.low %v1503_v19, %v1498_v27  ;;  %v3221_v59 = vmul.u32.u64.high %v1503_v19, %v1498_v27, %v3220_v56 }
 0x207   : > { %v1502_v46 = vsel %vm1488_vm9, %v1499_v50, %v1501_v26  ;;  %v1491_v8 = vsel %vm1487_vm7, %v1471_v5, %v1474_v61  ;;  %v1493_v7 = vsel %vm1489_vm10, %v1477_v6, %v1492_v34  ;;  %vm1654_vm11 = vcmp.lt.s32.totalorder %v1653_v54, 2 }
 0x208   : > { %v899_v33 = vclz %v1828_v23  ;;  %v3224_v40 = vmul.u32.u64.low %v1503_v19, %v1502_v46  ;;  %v3225_v60 = vmul.u32.u64.high %v1503_v19, %v1502_v46, %v3224_v40  ;;  %v1494_v0 = vsel %vm1488_vm9, %v1491_v8, %v1493_v7 }
 0x209   : > { %v1513_v42 = vadd.s32 1, %v3221_v59  ;;  %vm1655_vm12 = vcmp.eq.s32.totalorder %v1653_v54, 0  ;;  %vm1658_vm13 = vcmp.eq.s32.totalorder %v1653_v54, 2  ;;  %v887_v62 = vadd.s32 %v3166_v12, %v3163_v51 }
 0x20a   : > { %v1829_v53 = vadd.s32 4294967294, %v899_v33  ;;  %vm1512_vm15 = vc.u32 %v3225_v60, %v3220_v56  ;;  %v1510_v44 = vmul.u32 %v1503_v19, %v1494_v0  ;;  %vm1651_vm1 = vweird.f32 %v2982_v52 }
 0x20b   : > { %v2047_v45 = vpop.eup %2046  ;;  %v1514_v48 = vsel %vm1512_vm15, %v1513_v42, %v3221_v59  ;;  %v917_v52 = vsub.s32 4, %v3204_v31  ;;  %vm833_vm0 = vcmp.lt.s32.totalorder %v3082_v21, 0  ;;  %vm832_vm2 = vcmp.le.f32.partialorder %v831_v43, 0.7853982 }
 0x20c   : > { %v2049_v4 = vpop.eup %2048  ;;  %v1659_v57 = vxor.u32 2147483648, %v2047_v45  ;;  %vm1830_vm14 = vcmp.lt.s32.totalorder %v1829_v53, 0  ;;  %v1515_v14 = vadd.s32 %v1514_v48, %v1510_v44  ;;  %v1511_v22 = vadd.s32 %v3220_v56, %v3225_v60 }
 0x20d   : > { %v1656_v41 = vxor.u32 2147483648, %v2049_v4  ;;  %v902_v15 = vsel %vm1830_vm14, 0, %v1829_v53  ;;  %v918_v30 = vsel %vm833_vm0, %v917_v52, %v3204_v31  ;;  %vm923_vm7 = vweird.f32 %v3082_v21 }
 0x20e   : > { %v1660_v9 = vsel %vm1658_vm13, %v1659_v57, %v2049_v4  ;;  %v903_v32 = vsub.s32 32, %v902_v15  ;;  %v907_v25 = vsub.s32 4294967266, %v902_v15  ;;  %v904_v29 = vshll.u32 %v895_v58, %v902_v15 }
 0x20f   : > { %v1657_v20 = vsel %vm1655_vm12, %v2047_v45, %v1656_v41  ;;  %v1516_v13 = vadd.s32 536870912, %v1515_v14  ;;  %v920_v19 = vsel %vm832_vm2, 0, %v918_v30  ;;  %vm1457_vm8 = vcmp.lt.s32.totalorder %v3125_v36, 0 }
 0x210   : > { %v1661_v28 = vsel %vm1654_vm11, %v1657_v20, %v1660_v9  ;;  %v905_v2 = vshrl.u32 %v887_v62, %v903_v32  ;;  %v908_v37 = vadd.s32 127, %v907_v25  ;;  %v924_v3 = vadd.s32 3, %v920_v19 }
 0x211   : > { %v1662_v18 = vsel %vm1651_vm1, nan, %v1661_v28  ;;  %v1517_v11 = vshrl.u32 %v1516_v13, 30  ;;  %vm1456_vm9 = vcmp.le.f32.partialorder %v1455_v35, 0.7853982  ;;  %vm1547_vm13 = vweird.f32 %v3125_v36 }
 0x212   : > { %1674 = vst [vmem:[%s2576_s10 + $0x58] sm:$0xff] %v1662_v18  ;;  %v906_v51 = vor.u32 %v905_v2, %v904_v29  ;;  %v909_v12 = vshll.u32 %v908_v37, 23  ;;  %v925_v23 = vand.u32 3, %v924_v3 }
 0x213   : > { %v1518_v6 = vshll.u32 %v1517_v11, 30  ;;  %v1541_v57 = vsub.s32 4, %v1517_v11 }
 0x214   : > { %v910_v17 = vor.u32 4788187, %v909_v12  ;;  %v913_v61 = vcvt.s32.f32 %v906_v51  ;;  %vm930_vm4 = vcmp.eq.s32.totalorder %v925_v23, 2  ;;  %vm927_vm5 = vcmp.eq.s32.totalorder %v925_v23, 0 }
 0x215   : > { %v1519_v1 = vsub.s32 %v1515_v14, %v1518_v6  ;;  %vm926_vm6 = vcmp.lt.s32.totalorder %v925_v23, 2  ;;  %v1542_v41 = vsel %vm1457_vm8, %v1541_v57, %v1517_v11 }
 0x216   : > { %v911_v39 = vand.u32 2147483647, %v910_v17  ;;  %v1544_v62 = vsel %vm1456_vm9, 0, %v1542_v41 }
 0x217   : > { %v1521_v55 = vsub.s32 0, %v1519_v1 }
 0x218   : > { %v914_v63 = vmul.f32 %v913_v61, %v911_v39 }
 0x219   : > { %v1852_v58 = vmin.u32 %v1521_v55, %v1519_v1 }
 0x21a   : > { %v915_v16 = vxor.u32 2147483648, %v914_v63 }
 0x21b   : > { %v1523_v49 = vclz %v1852_v58 }
 0x21c   : > { %v916_v47 = vsel %vm833_vm0, %v915_v16, %v914_v63 }
 0x21d   : > { %v919_v10 = vsel %vm832_vm2, %v3082_v21, %v916_v47  ;;  %v1853_v24 = vadd.s32 4294967294, %v1523_v49  ;;  %v1548_v21 = vadd.s32 3, %v1544_v62 }
 0x21e   : > { %2050 = vcosq.f32 %v919_v10 }
 0x21f   : > { %2052 = vsinq.f32 %v919_v10  ;;  %vm1854_vm3 = vcmp.lt.s32.totalorder %v1853_v24, 0  ;;  %v1549_v15 = vand.u32 3, %v1548_v21 }
 0x220   : > { %v1526_v34 = vsel %vm1854_vm3, 0, %v1853_v24 }
 0x221   : > { %v1527_v50 = vsub.s32 32, %v1526_v34  ;;  %v1531_v38 = vsub.s32 4294967266, %v1526_v34  ;;  %v1528_v43 = vshll.u32 %v1519_v1, %v1526_v34  ;;  %vm1554_vm10 = vcmp.eq.s32.totalorder %v1549_v15, 2 }
 0x222   : > { %vm1551_vm11 = vcmp.eq.s32.totalorder %v1549_v15, 0  ;;  %vm1550_vm12 = vcmp.lt.s32.totalorder %v1549_v15, 2 }
 0x223   : > { %v1529_v5 = vshrl.u32 %v1511_v22, %v1527_v50  ;;  %v1532_v27 = vadd.s32 127, %v1531_v38 }
 0x225   : > { %v1530_v26 = vor.u32 %v1529_v5, %v1528_v43  ;;  %v1533_v54 = vshll.u32 %v1532_v27, 23 }
 0x227   : > { %v1534_v8 = vor.u32 4788187, %v1533_v54  ;;  %v1537_v60 = vcvt.s32.f32 %v1530_v26 }
 0x228   : > { %v2051_v31 = vpop.eup %2050 }
 0x229   : > { %v2053_v46 = vpop.eup %2052  ;;  %v931_v59 = vxor.u32 2147483648, %v2051_v31  ;;  %v1535_v56 = vand.u32 2147483647, %v1534_v8 }
 0x22a   : > { %v928_v33 = vxor.u32 2147483648, %v2053_v46 }
 0x22b   : > { %v932_v7 = vsel %vm930_vm4, %v931_v59, %v2053_v46  ;;  %v1538_v4 = vmul.f32 %v1537_v60, %v1535_v56 }
 0x22c   : > { %v929_v40 = vsel %vm927_vm5, %v2051_v31, %v928_v33 }
 0x22d   : > { %v933_v45 = vsel %vm926_vm6, %v929_v40, %v932_v7  ;;  %v1539_v0 = vxor.u32 2147483648, %v1538_v4 }
 0x22e   : > { %v934_v53 = vsel %vm923_vm7, nan, %v933_v45 }
 0x22f   : > { %1667 = vst [vmem:[%s2576_s10 + $0x20] sm:$0xff] %v934_v53  ;;  %v1540_v42 = vsel %vm1457_vm8, %v1539_v0, %v1538_v4 }
 0x230   : > { %v1543_v9 = vsel %vm1456_vm9, %v3125_v36, %v1540_v42 }
 0x231   : > { %2054 = vcosq.f32 %v1543_v9 }
 0x232   : > { %2056 = vsinq.f32 %v1543_v9 }
 0x23b   : > { %v2055_v20 = vpop.eup %2054 }
 0x23c   : > { %v2057_v32 = vpop.eup %2056  ;;  %v1555_v25 = vxor.u32 2147483648, %v2055_v20 }
 0x23d   : > { %v1552_v44 = vxor.u32 2147483648, %v2057_v32 }
 0x23e   : > { %v1556_v35 = vsel %vm1554_vm10, %v1555_v25, %v2057_v32 }
 0x23f   : > { %v1553_v28 = vsel %vm1551_vm11, %v2055_v20, %v1552_v44 }
 0x240   : > { %v1557_v29 = vsel %vm1550_vm12, %v1553_v28, %v1556_v35 }
 0x241   : > { %v1558_v48 = vsel %vm1547_vm13, nan, %v1557_v29 }
 0x242   : > { %1673 = vst [vmem:[%s2576_s10 + $0x50] sm:$0xff] %v1558_v48 }
 0x243   : > { %2072 = shalt.err (!%p2069_p5)
}
 0x244   : > { %s2073_s5 = scalar_lea.hbm %s3254_s27, 1536  ;;  %s2077_s8 = scalar_lea.hbm %s3311_s3, 4608 }
 0x245   : > { %p2074_p6 = scmp.ne.s32.totalorder %s3254_s27, %s2073_s5  ;;  %p2078_p10 = scmp.lt.u32.totalorder %s3254_s27, %s3311_s3 }
 0x246   : > { %p2079_p11 = scmp.lt.u32.totalorder %s2077_s8, %s2073_s5  ;;  %p2081_p13 = scmp.lt.u32.totalorder %s2073_s5, %s3254_s27 }
 0x247   : > { %p2075_p7 = pnand %p2074_p6, %p2208_p4 }
 0x248   : > { %p2080_p12 = por %p2079_p11, %p2078_p10 }
 0x249   : > { %p2076_p9 = pneg %p2075_p7 }
 0x24a   : > { %p2082_p0 = por %p2081_p13, %p2080_p12 }
 0x24c   : > { %p2083_p1 = pnand %p2082_p0, %p2076_p9 }
 0x24e   : > { %2086 = shalt.err (!%p2083_p1)
}
 0x24f   : > { %s2146_s11 = smov 128   ;;  %s2147_s18 = smov 8  }
 0x250   : > { %1947 = dma.vmem_to_hbm [thread:$0]  (%p2208_p4), %s3257_s21, 1536, %s3254_s27, %s3262_s15, %s2146_s11, %s2146_s11, %s2147_s18  }
 0x251 PF: > { %p1953_p2 = scmp.ge.s32.totalorder %s2137_s17, 2  ;;  %s1705_s19 = sand.u32 1, %s2117_s12  }
 0x252   : > { %s1706_s23 = scalar_lea.sflag [#allocation3], %s1705_s19 }
 0x253   : > { %p1950_p3 = pnand %p1953_p2, %p2215_p8 }
 0x255   : > { %2112 = dma.done.wait (!%p1950_p3), %s1706_s23, 1536  }
 0x256   : > { %2114 = vsyncadd (!%p1950_p3), %s1706_s23, 4294965760  ;;  %s16_s17 = sadd.s32 1, %s2137_s17   ;;  %s3334_s12 = smov %s2121_s13 }
 0x257   : > { %p13_p5 = scmp.ge.s32.totalorder %s16_s17, 5   ;;  %s3335_s13 = smov %s2125_s14 }
 0x258   : > { %s3336_s14 = smov %s2221_s25  ;;  %s3337_s15 = smov %s2133_s16 }
 0x259   : > { %s3338_s16 = smov %s3340_s20  ;;  %15 = sbr.rel (!%p13_p5) target bundleno = 4 (0x4), region = 73 }
 0x260   :  { %1711 = vsyncpa [#allocation3], 1 }
 0x261   :  { %1713 = vsyncpa [#allocation3 + $0x1], 1 }

</bundles_post_ra>
